<compile_context>
chip_gen: v6e
topology: v6e:2x2x1
jax: 0.10.0
libtpu: 0.0.40
codegen_flags: <defaults>
</compile_context>

<pallas_src>
import itertools
import math

import numpy as np

import jax
import jax.numpy as jnp
from jax.experimental import pallas as pl
from jax.experimental.pallas import tpu as pltpu

MAX_JPEG_TILE_ROWS = 2048             # packed (., 128) rows per grid step (1 MiB f32)
COLOR_TILE_TARGET_BYTES = 512 * 1024  # per-array block budget for the color kernels


# ------------------------------------------------------------------ constants
def quality_to_factor(quality):
    if quality < 50:
        q = 5000.0 / quality
    else:
        q = 200.0 - quality * 2
    return q / 100.0


def _block_diag2(m):
    out = np.zeros((128, 128), dtype=np.float32)
    out[:64, :64] = m
    out[64:, 64:] = m
    return out


def _make_folded_matrices(factor):
    """Fold DCT scale, quant tables (x factor), IDCT alpha and the 0.25 factor
    into the two matmul operands.  Returns 128x128 block-diagonal matrices that
    act on rows holding two packed 8x8 blocks (lane-dense layout)."""
    t = np.zeros((8, 8, 8, 8), dtype=np.float32)
    ti = np.zeros((8, 8, 8, 8), dtype=np.float32)
    for x, y, u, v in itertools.product(range(8), repeat=4):
        t[x, y, u, v] = math.cos((2 * x + 1) * u * math.pi / 16) * math.cos(
            (2 * y + 1) * v * math.pi / 16)
        ti[x, y, u, v] = math.cos((2 * u + 1) * x * math.pi / 16) * math.cos(
            (2 * v + 1) * y * math.pi / 16)
    dct_m = t.reshape(64, 64)      # [pixel xy, coeff uv]
    idct_m = ti.reshape(64, 64)    # [coeff uv, pixel xy]

    alpha = np.array([1.0 / math.sqrt(2)] + [1.0] * 7, dtype=np.float32)
    alpha_uv = np.outer(alpha, alpha).astype(np.float32).reshape(64)
    scale_uv = alpha_uv * 0.25

    # JPEG quantization tables (note the .T, matching the reference code).
    y_table = np.array(
        [[16, 11, 10, 16, 24, 40, 51, 61],
         [12, 12, 14, 19, 26, 58, 60, 55],
         [14, 13, 16, 24, 40, 57, 69, 56],
         [14, 17, 22, 29, 51, 87, 80, 62],
         [18, 22, 37, 56, 68, 109, 103, 77],
         [24, 35, 55, 64, 81, 104, 113, 92],
         [49, 64, 78, 87, 103, 121, 120, 101],
         [72, 92, 95, 98, 112, 100, 103, 99]], dtype=np.float32).T
    c_table = np.empty((8, 8), dtype=np.float32)
    c_table.fill(99)
    c_table[:4, :4] = np.array(
        [[17, 18, 24, 47], [18, 21, 26, 66],
         [24, 26, 56, 99], [47, 66, 99, 99]], dtype=np.float32).T

    def fold(table):
        q = table.reshape(64) * factor
        dct_f = dct_m * (scale_uv / q)[None, :]          # DCT -> quantized coeffs
        idct_f = (q * alpha_uv * 0.25)[:, None] * idct_m  # dequant -> IDCT
        return (jnp.asarray(_block_diag2(dct_f)),
                jnp.asarray(_block_diag2(idct_f)))

    dct_y, idct_y = fold(y_table)
    dct_c, idct_c = fold(c_table)
    return dict(dct_y=dct_y, idct_y=idct_y, dct_c=dct_c, idct_c=idct_c)


# ------------------------------------------------------------------- kernels
def _color_fwd_kernel(r_ref, g_ref, b_ref, y_ref, cb_ref, cr_ref):
    # (x + 1) / 2 * 255 (compress_jpeg input scaling), then RGB -> YCbCr (JPEG).
    r = (r_ref[...] + 1.0) * 127.5
    g = (g_ref[...] + 1.0) * 127.5
    b = (b_ref[...] + 1.0) * 127.5
    y_ref[...] = 0.299 * r + 0.587 * g + 0.114 * b
    cb_ref[...] = -0.168736 * r - 0.331264 * g + 0.5 * b + 128.0
    cr_ref[...] = 0.5 * r - 0.418688 * g - 0.081312 * b + 128.0


def _color_bwd_kernel(y_ref, cb_ref, cr_ref, r_ref, g_ref, b_ref):
    y = y_ref[...]
    cb = cb_ref[...] - 128.0
    cr = cr_ref[...] - 128.0
    r = y + 1.402 * cr
    g = y - 0.344136 * cb - 0.714136 * cr
    b = y + 1.772 * cb

    def _post(v):
        v = jnp.minimum(255.0, jnp.maximum(0.0, v)) / 255.0   # decompress clamp
        v = v * 2.0 - 1.0                                     # back to [-1, 1]
        return jnp.clip(v, -1.0, 1.0)

    r_ref[...] = _post(r)
    g_ref[...] = _post(g)
    b_ref[...] = _post(b)


def _jpeg_core_kernel(blk_ref, dct_ref, idct_ref, out_ref):
    # Fused: DCT+scale+quant (one matmul) -> diff_round -> dequant+IDCT (one matmul)
    q = jnp.dot(blk_ref[...] - 128.0, dct_ref[...],
                preferred_element_type=jnp.float32)
    rq = jnp.round(q)
    d = q - rq
    q = rq + d * d * d                                        # diff_round (VALU)
    out_ref[...] = jnp.dot(q, idct_ref[...],
                           preferred_element_type=jnp.float32) + 128.0


# ------------------------------------------------------------------ wrappers
def _pick_row_tile(total_rows, width, target_bytes=COLOR_TILE_TARGET_BYTES):
    """Largest power-of-two row tile (mult. of 8) that divides total_rows and
    keeps one (rows, width) f32 block under target_bytes."""
    cap = max(8, min(1024, (target_bytes // (4 * width)) // 8 * 8))
    for cand in (1024, 512, 256, 128, 64, 32, 16, 8):
        if cand <= cap and cand <= total_rows and total_rows % cand == 0:
            return cand
    return 8  # unreachable: total_rows is always a multiple of 16 here


def _elementwise_color(kernel, a, b, c):
    rows, width = a.shape  # (B*H, W)
    rt = _pick_row_tile(rows, width)
    spec = pl.BlockSpec((rt, width), lambda i: (i, 0))
    return pl.pallas_call(
        kernel,
        out_shape=tuple(jax.ShapeDtypeStruct((rows, width), jnp.float32)
                        for _ in range(3)),
        grid=(rows // rt,),
        in_specs=[spec, spec, spec],
        out_specs=(spec, spec, spec),
        compiler_params=pltpu.CompilerParams(dimension_semantics=("parallel",)),
    )(a, b, c)


def _jpeg_core(blocks64, dct_fold, idct_fold):
    """blocks64: (n_blocks, 64).  Packs 2 blocks per 128-lane row, runs the
    fused JPEG core with large row tiles, unpacks."""
    n = blocks64.shape[0]
    n_rows = -(-n // 2)
    tile = min(MAX_JPEG_TILE_ROWS, -(-n_rows // 8) * 8)
    n_rows_pad = -(-n_rows // tile) * tile
    n_pad = 2 * n_rows_pad
    if n_pad != n:
        blocks64 = jnp.pad(blocks64, ((0, n_pad - n), (0, 0)))
    packed = blocks64.reshape(n_rows_pad, 128)

    out = pl.pallas_call(
        _jpeg_core_kernel,
        out_shape=jax.ShapeDtypeStruct((n_rows_pad, 128), jnp.float32),
        grid=(n_rows_pad // tile,),
        in_specs=[
            pl.BlockSpec((tile, 128), lambda i: (i, 0)),   # packed blocks
            pl.BlockSpec((128, 128), lambda i: (0, 0)),    # folded DCT (block-diag)
            pl.BlockSpec((128, 128), lambda i: (0, 0)),    # folded IDCT (block-diag)
        ],
        out_specs=pl.BlockSpec((tile, 128), lambda i: (i, 0)),
        compiler_params=pltpu.CompilerParams(dimension_semantics=("parallel",)),
    )(packed, dct_fold, idct_fold)
    return out.reshape(n_pad, 64)[:n]


# ------------------------------------------------------------- layout glue
def _block_split(plane):  # (B, H, W) -> (B * H/8 * W/8, 64)
    B, H, W = plane.shape
    p = plane.reshape(B, H // 8, 8, W // 8, 8).transpose(0, 1, 3, 2, 4)
    return p.reshape(B * (H // 8) * (W // 8), 64)


def _block_merge(blocks, B, H, W):  # inverse of _block_split
    p = blocks.reshape(B, H // 8, W // 8, 8, 8).transpose(0, 1, 3, 2, 4)
    return p.reshape(B, H, W)


def _avg_pool2(x):  # chroma 2x2 average pooling
    B, H, W = x.shape
    return x.reshape(B, H // 2, 2, W // 2, 2).mean(axis=(2, 4))


def _chroma_up(x, k=2):  # replicate chroma_upsampling.repeat (torch .repeat == tile)
    B, h, w = x.shape
    x = jnp.tile(x[..., None], (1, 1, k, k))
    return x.reshape(B, h * k, w * k)


# --------------------------------------------------------------- full module
def diff_jpeg(x, quality=75):
    """DiffJPEG forward: x is NCHW float32 in [-1, 1]; C == 3; H, W % 16 == 0."""
    B, C, H, W = x.shape
    assert C == 3 and H % 16 == 0 and W % 16 == 0
    factor = quality_to_factor(quality)
    mats = _make_folded_matrices(factor)

    r = x[:, 0].reshape(B * H, W).astype(jnp.float32)
    g = x[:, 1].reshape(B * H, W).astype(jnp.float32)
    b = x[:, 2].reshape(B * H, W).astype(jnp.float32)

    # compress: color conversion + chroma subsampling
    y, cb, cr = _elementwise_color(_color_fwd_kernel, r, g, b)
    y = y.reshape(B, H, W)
    cb_s = _avg_pool2(cb.reshape(B, H, W))
    cr_s = _avg_pool2(cr.reshape(B, H, W))

    # 8x8 blocks -> fused DCT/quant/diff_round/dequant/IDCT Pallas kernel
    y_rec = _jpeg_core(_block_split(y), mats["dct_y"], mats["idct_y"])
    cb_rec = _jpeg_core(_block_split(cb_s), mats["dct_c"], mats["idct_c"])
    cr_rec = _jpeg_core(_block_split(cr_s), mats["dct_c"], mats["idct_c"])

    # decompress: merge blocks, chroma upsample, color back + clamps
    y_img = _block_merge(y_rec, B, H, W)
    cb_up = _chroma_up(_block_merge(cb_rec, B, H // 2, W // 2))
    cr_up = _chroma_up(_block_merge(cr_rec, B, H // 2, W // 2))

    r_o, g_o, b_o = _elementwise_color(
        _color_bwd_kernel,
        y_img.reshape(B * H, W), cb_up.reshape(B * H, W), cr_up.reshape(B * H, W))

    return jnp.stack([r_o.reshape(B, H, W),
                      g_o.reshape(B, H, W),
                      b_o.reshape(B, H, W)], axis=1)


if __name__ == "__main__":
    key = jax.random.PRNGKey(0)
    # DiffJPEG forward only consumes image_cover_mask[0]; it must be 3-channel.
    x = jax.random.uniform(key, (2, 3, 16, 16), jnp.float32, minval=-1.0, maxval=1.0)

    fn = jax.jit(diff_jpeg, static_argnums=1)
    out = fn(x, 75)
    out = jax.block_until_ready(out)

    assert out.shape == x.shape and out.dtype == jnp.float32
    assert bool(jnp.all(jnp.isfinite(out)))
    assert bool(jnp.all(out >= -1.0)) and bool(jnp.all(out <= 1.0))
    print("KERNEL_OK")
</pallas_src>

<mosaic_0001>
module attributes {stable_mosaic.version = 11 : i64} {
  func.func @_color_fwd_kernel(%arg0: i32, %arg1: memref<32x16xf32, #tpu.memory_space<vmem>>, %arg2: memref<32x16xf32, #tpu.memory_space<vmem>>, %arg3: memref<32x16xf32, #tpu.memory_space<vmem>>, %arg4: memref<32x16xf32, #tpu.memory_space<vmem>>, %arg5: memref<32x16xf32, #tpu.memory_space<vmem>>, %arg6: memref<32x16xf32, #tpu.memory_space<vmem>>) attributes {dimension_semantics = [#tpu.dimension_semantics<parallel>], iteration_bounds = array<i64: 1>, scalar_prefetch = 0 : i64, scratch_operands = 0 : i64, tpu.core_type = #tpu.core_type<tc>, window_params = [{transform_indices = @transform_0, window_bounds = array<i64: 32, 16>}, {transform_indices = @transform_1, window_bounds = array<i64: 32, 16>}, {transform_indices = @transform_2, window_bounds = array<i64: 32, 16>}, {transform_indices = @transform_3, window_bounds = array<i64: 32, 16>}, {transform_indices = @transform_4, window_bounds = array<i64: 32, 16>}, {transform_indices = @transform_5, window_bounds = array<i64: 32, 16>}]} {
    %c0 = arith.constant 0 : index
    %c0_0 = arith.constant 0 : index
    %0 = vector.load %arg1[%c0, %c0_0] : memref<32x16xf32, #tpu.memory_space<vmem>>, vector<32x16xf32>
    %cst = arith.constant 1.000000e+00 : f32
    %1 = vector.broadcast %cst : f32 to vector<32x16xf32>
    %2 = arith.addf %0, %1 : vector<32x16xf32>
    %cst_1 = arith.constant 1.275000e+02 : f32
    %3 = vector.broadcast %cst_1 : f32 to vector<32x16xf32>
    %4 = arith.mulf %2, %3 : vector<32x16xf32>
    %c0_2 = arith.constant 0 : index
    %c0_3 = arith.constant 0 : index
    %5 = vector.load %arg2[%c0_2, %c0_3] : memref<32x16xf32, #tpu.memory_space<vmem>>, vector<32x16xf32>
    %cst_4 = arith.constant 1.000000e+00 : f32
    %6 = vector.broadcast %cst_4 : f32 to vector<32x16xf32>
    %7 = arith.addf %5, %6 : vector<32x16xf32>
    %cst_5 = arith.constant 1.275000e+02 : f32
    %8 = vector.broadcast %cst_5 : f32 to vector<32x16xf32>
    %9 = arith.mulf %7, %8 : vector<32x16xf32>
    %c0_6 = arith.constant 0 : index
    %c0_7 = arith.constant 0 : index
    %10 = vector.load %arg3[%c0_6, %c0_7] : memref<32x16xf32, #tpu.memory_space<vmem>>, vector<32x16xf32>
    %cst_8 = arith.constant 1.000000e+00 : f32
    %11 = vector.broadcast %cst_8 : f32 to vector<32x16xf32>
    %12 = arith.addf %10, %11 : vector<32x16xf32>
    %cst_9 = arith.constant 1.275000e+02 : f32
    %13 = vector.broadcast %cst_9 : f32 to vector<32x16xf32>
    %14 = arith.mulf %12, %13 : vector<32x16xf32>
    %cst_10 = arith.constant 2.990000e-01 : f32
    %15 = vector.broadcast %cst_10 : f32 to vector<32x16xf32>
    %16 = arith.mulf %15, %4 : vector<32x16xf32>
    %cst_11 = arith.constant 5.870000e-01 : f32
    %17 = vector.broadcast %cst_11 : f32 to vector<32x16xf32>
    %18 = arith.mulf %17, %9 : vector<32x16xf32>
    %19 = arith.addf %16, %18 : vector<32x16xf32>
    %cst_12 = arith.constant 1.140000e-01 : f32
    %20 = vector.broadcast %cst_12 : f32 to vector<32x16xf32>
    %21 = arith.mulf %20, %14 : vector<32x16xf32>
    %22 = arith.addf %19, %21 : vector<32x16xf32>
    %c0_13 = arith.constant 0 : index
    %c0_14 = arith.constant 0 : index
    %23 = vector.load %arg4[%c0_13, %c0_14] : memref<32x16xf32, #tpu.memory_space<vmem>>, vector<32x16xf32>
    tpu.vector_store %arg4[%c0_13, %c0_14], %22 {strides = array<i32>} : memref<32x16xf32, #tpu.memory_space<vmem>>, vector<32x16xf32>,
    %cst_15 = arith.constant -1.687360e-01 : f32
    %24 = vector.broadcast %cst_15 : f32 to vector<32x16xf32>
    %25 = arith.mulf %24, %4 : vector<32x16xf32>
    %cst_16 = arith.constant 3.312640e-01 : f32
    %26 = vector.broadcast %cst_16 : f32 to vector<32x16xf32>
    %27 = arith.mulf %26, %9 : vector<32x16xf32>
    %28 = arith.subf %25, %27 : vector<32x16xf32>
    %cst_17 = arith.constant 5.000000e-01 : f32
    %29 = vector.broadcast %cst_17 : f32 to vector<32x16xf32>
    %30 = arith.mulf %29, %14 : vector<32x16xf32>
    %31 = arith.addf %28, %30 : vector<32x16xf32>
    %cst_18 = arith.constant 1.280000e+02 : f32
    %32 = vector.broadcast %cst_18 : f32 to vector<32x16xf32>
    %33 = arith.addf %31, %32 : vector<32x16xf32>
    %c0_19 = arith.constant 0 : index
    %c0_20 = arith.constant 0 : index
    %34 = vector.load %arg5[%c0_19, %c0_20] : memref<32x16xf32, #tpu.memory_space<vmem>>, vector<32x16xf32>
    tpu.vector_store %arg5[%c0_19, %c0_20], %33 {strides = array<i32>} : memref<32x16xf32, #tpu.memory_space<vmem>>, vector<32x16xf32>,
    %cst_21 = arith.constant 5.000000e-01 : f32
    %35 = vector.broadcast %cst_21 : f32 to vector<32x16xf32>
    %36 = arith.mulf %35, %4 : vector<32x16xf32>
    %cst_22 = arith.constant 4.186880e-01 : f32
    %37 = vector.broadcast %cst_22 : f32 to vector<32x16xf32>
    %38 = arith.mulf %37, %9 : vector<32x16xf32>
    %39 = arith.subf %36, %38 : vector<32x16xf32>
    %cst_23 = arith.constant 8.131200e-02 : f32
    %40 = vector.broadcast %cst_23 : f32 to vector<32x16xf32>
    %41 = arith.mulf %40, %14 : vector<32x16xf32>
    %42 = arith.subf %39, %41 : vector<32x16xf32>
    %cst_24 = arith.constant 1.280000e+02 : f32
    %43 = vector.broadcast %cst_24 : f32 to vector<32x16xf32>
    %44 = arith.addf %42, %43 : vector<32x16xf32>
    %c0_25 = arith.constant 0 : index
    %c0_26 = arith.constant 0 : index
    %45 = vector.load %arg6[%c0_25, %c0_26] : memref<32x16xf32, #tpu.memory_space<vmem>>, vector<32x16xf32>
    tpu.vector_store %arg6[%c0_25, %c0_26], %44 {strides = array<i32>} : memref<32x16xf32, #tpu.memory_space<vmem>>, vector<32x16xf32>,
    return
  }
  func.func @transform_0(%arg0: i32) -> (i32, i32) {
    %c0_i32 = arith.constant 0 : i32
    %c0_i32_0 = arith.constant 0 : i32
    return %arg0, %c0_i32 : i32, i32
  }
  func.func @transform_1(%arg0: i32) -> (i32, i32) {
    %c0_i32 = arith.constant 0 : i32
    %c0_i32_0 = arith.constant 0 : i32
    return %arg0, %c0_i32 : i32, i32
  }
  func.func @transform_2(%arg0: i32) -> (i32, i32) {
    %c0_i32 = arith.constant 0 : i32
    %c0_i32_0 = arith.constant 0 : i32
    return %arg0, %c0_i32 : i32, i32
  }
  func.func @transform_3(%arg0: i32) -> (i32, i32) {
    %c0_i32 = arith.constant 0 : i32
    %c0_i32_0 = arith.constant 0 : i32
    return %arg0, %c0_i32 : i32, i32
  }
  func.func @transform_4(%arg0: i32) -> (i32, i32) {
    %c0_i32 = arith.constant 0 : i32
    %c0_i32_0 = arith.constant 0 : i32
    return %arg0, %c0_i32 : i32, i32
  }
  func.func @transform_5(%arg0: i32) -> (i32, i32) {
    %c0_i32 = arith.constant 0 : i32
    %c0_i32_0 = arith.constant 0 : i32
    return %arg0, %c0_i32 : i32, i32
  }
}

module attributes {stable_mosaic.version = 11 : i64} {
  func.func @_jpeg_core_kernel(%arg0: i32, %arg1: memref<8x128xf32, #tpu.memory_space<vmem>>, %arg2: memref<128x128xf32, #tpu.memory_space<vmem>>, %arg3: memref<128x128xf32, #tpu.memory_space<vmem>>, %arg4: memref<8x128xf32, #tpu.memory_space<vmem>>) attributes {dimension_semantics = [#tpu.dimension_semantics<parallel>], iteration_bounds = array<i64: 1>, scalar_prefetch = 0 : i64, scratch_operands = 0 : i64, tpu.core_type = #tpu.core_type<tc>, window_params = [{transform_indices = @transform_0, window_bounds = array<i64: 8, 128>}, {pipeline_mode = #tpu.pipeline_mode<synchronous>, transform_indices = @transform_1, window_bounds = array<i64: 128, 128>}, {pipeline_mode = #tpu.pipeline_mode<synchronous>, transform_indices = @transform_2, window_bounds = array<i64: 128, 128>}, {transform_indices = @transform_3, window_bounds = array<i64: 8, 128>}]} {
    %c0 = arith.constant 0 : index
    %c0_0 = arith.constant 0 : index
    %0 = vector.load %arg1[%c0, %c0_0] : memref<8x128xf32, #tpu.memory_space<vmem>>, vector<8x128xf32>
    %cst = arith.constant 1.280000e+02 : f32
    %1 = vector.broadcast %cst : f32 to vector<8x128xf32>
    %2 = arith.subf %0, %1 : vector<8x128xf32>
    %c0_1 = arith.constant 0 : index
    %c0_2 = arith.constant 0 : index
    %3 = vector.load %arg2[%c0_1, %c0_2] : memref<128x128xf32, #tpu.memory_space<vmem>>, vector<128x128xf32>
    %cst_3 = arith.constant dense<0.000000e+00> : vector<8x128xf32>
    %4 = tpu.matmul %2, %3, %cst_3 {dimension_numbers = #tpu.dot_dimension_numbers<[1], [0], [0], [1], [0, 0, 1, 1], [], []>} : vector<8x128xf32>, vector<128x128xf32>, vector<8x128xf32> -> vector<8x128xf32>
    %5 = math.roundeven %4 : vector<8x128xf32>
    %6 = arith.subf %4, %5 : vector<8x128xf32>
    %7 = arith.mulf %6, %6 : vector<8x128xf32>
    %8 = arith.mulf %7, %6 : vector<8x128xf32>
    %9 = arith.addf %5, %8 : vector<8x128xf32>
    %c0_4 = arith.constant 0 : index
    %c0_5 = arith.constant 0 : index
    %10 = vector.load %arg3[%c0_4, %c0_5] : memref<128x128xf32, #tpu.memory_space<vmem>>, vector<128x128xf32>
    %cst_6 = arith.constant dense<0.000000e+00> : vector<8x128xf32>
    %11 = tpu.matmul %9, %10, %cst_6 {dimension_numbers = #tpu.dot_dimension_numbers<[1], [0], [0], [1], [0, 0, 1, 1], [], []>} : vector<8x128xf32>, vector<128x128xf32>, vector<8x128xf32> -> vector<8x128xf32>
    %cst_7 = arith.constant 1.280000e+02 : f32
    %12 = vector.broadcast %cst_7 : f32 to vector<8x128xf32>
    %13 = arith.addf %11, %12 : vector<8x128xf32>
    %c0_8 = arith.constant 0 : index
    %c0_9 = arith.constant 0 : index
    %14 = vector.load %arg4[%c0_8, %c0_9] : memref<8x128xf32, #tpu.memory_space<vmem>>, vector<8x128xf32>
    tpu.vector_store %arg4[%c0_8, %c0_9], %13 {strides = array<i32>} : memref<8x128xf32, #tpu.memory_space<vmem>>, vector<8x128xf32>,
    return
  }
  func.func @transform_0(%arg0: i32) -> (i32, i32) {
    %c0_i32 = arith.constant 0 : i32
    %c0_i32_0 = arith.constant 0 : i32
    return %arg0, %c0_i32 : i32, i32
  }
  func.func @transform_1(%arg0: i32) -> (i32, i32) {
    %c0_i32 = arith.constant 0 : i32
    %c0_i32_0 = arith.constant 0 : i32
    %c0_i32_1 = arith.constant 0 : i32
    return %c0_i32, %c0_i32_0 : i32, i32
  }
  func.func @transform_2(%arg0: i32) -> (i32, i32) {
    %c0_i32 = arith.constant 0 : i32
    %c0_i32_0 = arith.constant 0 : i32
    %c0_i32_1 = arith.constant 0 : i32
    return %c0_i32, %c0_i32_0 : i32, i32
  }
  func.func @transform_3(%arg0: i32) -> (i32, i32) {
    %c0_i32 = arith.constant 0 : i32
    %c0_i32_0 = arith.constant 0 : i32
    return %arg0, %c0_i32 : i32, i32
  }
}

module attributes {stable_mosaic.version = 11 : i64} {
  func.func @_color_bwd_kernel(%arg0: i32, %arg1: memref<32x16xf32, #tpu.memory_space<vmem>>, %arg2: memref<32x16xf32, #tpu.memory_space<vmem>>, %arg3: memref<32x16xf32, #tpu.memory_space<vmem>>, %arg4: memref<32x16xf32, #tpu.memory_space<vmem>>, %arg5: memref<32x16xf32, #tpu.memory_space<vmem>>, %arg6: memref<32x16xf32, #tpu.memory_space<vmem>>) attributes {dimension_semantics = [#tpu.dimension_semantics<parallel>], iteration_bounds = array<i64: 1>, scalar_prefetch = 0 : i64, scratch_operands = 0 : i64, tpu.core_type = #tpu.core_type<tc>, window_params = [{transform_indices = @transform_0, window_bounds = array<i64: 32, 16>}, {transform_indices = @transform_1, window_bounds = array<i64: 32, 16>}, {transform_indices = @transform_2, window_bounds = array<i64: 32, 16>}, {transform_indices = @transform_3, window_bounds = array<i64: 32, 16>}, {transform_indices = @transform_4, window_bounds = array<i64: 32, 16>}, {transform_indices = @transform_5, window_bounds = array<i64: 32, 16>}]} {
    %c0 = arith.constant 0 : index
    %c0_0 = arith.constant 0 : index
    %0 = vector.load %arg1[%c0, %c0_0] : memref<32x16xf32, #tpu.memory_space<vmem>>, vector<32x16xf32>
    %c0_1 = arith.constant 0 : index
    %c0_2 = arith.constant 0 : index
    %1 = vector.load %arg2[%c0_1, %c0_2] : memref<32x16xf32, #tpu.memory_space<vmem>>, vector<32x16xf32>
    %cst = arith.constant 1.280000e+02 : f32
    %2 = vector.broadcast %cst : f32 to vector<32x16xf32>
    %3 = arith.subf %1, %2 : vector<32x16xf32>
    %c0_3 = arith.constant 0 : index
    %c0_4 = arith.constant 0 : index
    %4 = vector.load %arg3[%c0_3, %c0_4] : memref<32x16xf32, #tpu.memory_space<vmem>>, vector<32x16xf32>
    %cst_5 = arith.constant 1.280000e+02 : f32
    %5 = vector.broadcast %cst_5 : f32 to vector<32x16xf32>
    %6 = arith.subf %4, %5 : vector<32x16xf32>
    %cst_6 = arith.constant 1.402000e+00 : f32
    %7 = vector.broadcast %cst_6 : f32 to vector<32x16xf32>
    %8 = arith.mulf %7, %6 : vector<32x16xf32>
    %9 = arith.addf %0, %8 : vector<32x16xf32>
    %cst_7 = arith.constant 3.441360e-01 : f32
    %10 = vector.broadcast %cst_7 : f32 to vector<32x16xf32>
    %11 = arith.mulf %10, %3 : vector<32x16xf32>
    %12 = arith.subf %0, %11 : vector<32x16xf32>
    %cst_8 = arith.constant 7.141360e-01 : f32
    %13 = vector.broadcast %cst_8 : f32 to vector<32x16xf32>
    %14 = arith.mulf %13, %6 : vector<32x16xf32>
    %15 = arith.subf %12, %14 : vector<32x16xf32>
    %cst_9 = arith.constant 1.772000e+00 : f32
    %16 = vector.broadcast %cst_9 : f32 to vector<32x16xf32>
    %17 = arith.mulf %16, %3 : vector<32x16xf32>
    %18 = arith.addf %0, %17 : vector<32x16xf32>
    %cst_10 = arith.constant 0.000000e+00 : f32
    %19 = vector.broadcast %cst_10 : f32 to vector<32x16xf32>
    %20 = arith.maximumf %19, %9 : vector<32x16xf32>
    %cst_11 = arith.constant 2.550000e+02 : f32
    %21 = vector.broadcast %cst_11 : f32 to vector<32x16xf32>
    %22 = arith.minimumf %21, %20 : vector<32x16xf32>
    %cst_12 = arith.constant 2.550000e+02 : f32
    %23 = vector.broadcast %cst_12 : f32 to vector<32x16xf32>
    %24 = arith.divf %22, %23 : vector<32x16xf32>
    %cst_13 = arith.constant 2.000000e+00 : f32
    %25 = vector.broadcast %cst_13 : f32 to vector<32x16xf32>
    %26 = arith.mulf %24, %25 : vector<32x16xf32>
    %cst_14 = arith.constant 1.000000e+00 : f32
    %27 = vector.broadcast %cst_14 : f32 to vector<32x16xf32>
    %28 = arith.subf %26, %27 : vector<32x16xf32>
    %cst_15 = arith.constant -1.000000e+00 : f32
    %cst_16 = arith.constant 1.000000e+00 : f32
    %29 = vector.broadcast %cst_15 : f32 to vector<32x16xf32>
    %30 = arith.maximumf %29, %28 : vector<32x16xf32>
    %31 = vector.broadcast %cst_16 : f32 to vector<32x16xf32>
    %32 = arith.minimumf %31, %30 : vector<32x16xf32>
    %c0_17 = arith.constant 0 : index
    %c0_18 = arith.constant 0 : index
    %33 = vector.load %arg4[%c0_17, %c0_18] : memref<32x16xf32, #tpu.memory_space<vmem>>, vector<32x16xf32>
    tpu.vector_store %arg4[%c0_17, %c0_18], %32 {strides = array<i32>} : memref<32x16xf32, #tpu.memory_space<vmem>>, vector<32x16xf32>,
    %cst_19 = arith.constant 0.000000e+00 : f32
    %34 = vector.broadcast %cst_19 : f32 to vector<32x16xf32>
    %35 = arith.maximumf %34, %15 : vector<32x16xf32>
    %cst_20 = arith.constant 2.550000e+02 : f32
    %36 = vector.broadcast %cst_20 : f32 to vector<32x16xf32>
    %37 = arith.minimumf %36, %35 : vector<32x16xf32>
    %cst_21 = arith.constant 2.550000e+02 : f32
    %38 = vector.broadcast %cst_21 : f32 to vector<32x16xf32>
    %39 = arith.divf %37, %38 : vector<32x16xf32>
    %cst_22 = arith.constant 2.000000e+00 : f32
    %40 = vector.broadcast %cst_22 : f32 to vector<32x16xf32>
    %41 = arith.mulf %39, %40 : vector<32x16xf32>
    %cst_23 = arith.constant 1.000000e+00 : f32
    %42 = vector.broadcast %cst_23 : f32 to vector<32x16xf32>
    %43 = arith.subf %41, %42 : vector<32x16xf32>
    %cst_24 = arith.constant -1.000000e+00 : f32
    %cst_25 = arith.constant 1.000000e+00 : f32
    %44 = vector.broadcast %cst_24 : f32 to vector<32x16xf32>
    %45 = arith.maximumf %44, %43 : vector<32x16xf32>
    %46 = vector.broadcast %cst_25 : f32 to vector<32x16xf32>
    %47 = arith.minimumf %46, %45 : vector<32x16xf32>
    %c0_26 = arith.constant 0 : index
    %c0_27 = arith.constant 0 : index
    %48 = vector.load %arg5[%c0_26, %c0_27] : memref<32x16xf32, #tpu.memory_space<vmem>>, vector<32x16xf32>
    tpu.vector_store %arg5[%c0_26, %c0_27], %47 {strides = array<i32>} : memref<32x16xf32, #tpu.memory_space<vmem>>, vector<32x16xf32>,
    %cst_28 = arith.constant 0.000000e+00 : f32
    %49 = vector.broadcast %cst_28 : f32 to vector<32x16xf32>
    %50 = arith.maximumf %49, %18 : vector<32x16xf32>
    %cst_29 = arith.constant 2.550000e+02 : f32
    %51 = vector.broadcast %cst_29 : f32 to vector<32x16xf32>
    %52 = arith.minimumf %51, %50 : vector<32x16xf32>
    %cst_30 = arith.constant 2.550000e+02 : f32
    %53 = vector.broadcast %cst_30 : f32 to vector<32x16xf32>
    %54 = arith.divf %52, %53 : vector<32x16xf32>
    %cst_31 = arith.constant 2.000000e+00 : f32
    %55 = vector.broadcast %cst_31 : f32 to vector<32x16xf32>
    %56 = arith.mulf %54, %55 : vector<32x16xf32>
    %cst_32 = arith.constant 1.000000e+00 : f32
    %57 = vector.broadcast %cst_32 : f32 to vector<32x16xf32>
    %58 = arith.subf %56, %57 : vector<32x16xf32>
    %cst_33 = arith.constant -1.000000e+00 : f32
    %cst_34 = arith.constant 1.000000e+00 : f32
    %59 = vector.broadcast %cst_33 : f32 to vector<32x16xf32>
    %60 = arith.maximumf %59, %58 : vector<32x16xf32>
    %61 = vector.broadcast %cst_34 : f32 to vector<32x16xf32>
    %62 = arith.minimumf %61, %60 : vector<32x16xf32>
    %c0_35 = arith.constant 0 : index
    %c0_36 = arith.constant 0 : index
    %63 = vector.load %arg6[%c0_35, %c0_36] : memref<32x16xf32, #tpu.memory_space<vmem>>, vector<32x16xf32>
    tpu.vector_store %arg6[%c0_35, %c0_36], %62 {strides = array<i32>} : memref<32x16xf32, #tpu.memory_space<vmem>>, vector<32x16xf32>,
    return
  }
  func.func @transform_0(%arg0: i32) -> (i32, i32) {
    %c0_i32 = arith.constant 0 : i32
    %c0_i32_0 = arith.constant 0 : i32
    return %arg0, %c0_i32 : i32, i32
  }
  func.func @transform_1(%arg0: i32) -> (i32, i32) {
    %c0_i32 = arith.constant 0 : i32
    %c0_i32_0 = arith.constant 0 : i32
    return %arg0, %c0_i32 : i32, i32
  }
  func.func @transform_2(%arg0: i32) -> (i32, i32) {
    %c0_i32 = arith.constant 0 : i32
    %c0_i32_0 = arith.constant 0 : i32
    return %arg0, %c0_i32 : i32, i32
  }
  func.func @transform_3(%arg0: i32) -> (i32, i32) {
    %c0_i32 = arith.constant 0 : i32
    %c0_i32_0 = arith.constant 0 : i32
    return %arg0, %c0_i32 : i32, i32
  }
  func.func @transform_4(%arg0: i32) -> (i32, i32) {
    %c0_i32 = arith.constant 0 : i32
    %c0_i32_0 = arith.constant 0 : i32
    return %arg0, %c0_i32 : i32, i32
  }
  func.func @transform_5(%arg0: i32) -> (i32, i32) {
    %c0_i32 = arith.constant 0 : i32
    %c0_i32_0 = arith.constant 0 : i32
    return %arg0, %c0_i32 : i32, i32
  }
}

</mosaic_0001>

<bundles_post_ra>
// kernel: diff_jpeg.5
= control target key start
LH: loop header
LB: loop body
LE: loop exit
PB: predicated region body
PF: predicated region fallthrough
CT: control target
= control target key end

     0   :  { %vm73_vm0 = vcmask 130048   ;;  %s290_s0 = inlined_call_operand.vmem [shape: f32[32,16], index: 0, kind: input, shape index: {}]   ;;  %s291_s1 = inlined_call_operand.vmem [shape: f32[32,16], index: 1, kind: input, shape index: {}]   ;;  %s292_s2 = inlined_call_operand.vmem [shape: f32[32,16], index: 2, kind: input, shape index: {}]   ;;  %s293_s3 = inlined_call_operand.vmem [shape: f32[32,16], index: 3, kind: output, shape index: {0}]   ;;  %s294_s4 = inlined_call_operand.vmem [shape: f32[32,16], index: 4, kind: output, shape index: {1}]   ;;  %s295_s5 = inlined_call_operand.vmem [shape: f32[32,16], index: 5, kind: output, shape index: {2}]  }
   0x1   :  { %v17_v0 = vld [vmem:[%s290_s0] sm:$0xff]  ;;  %v18_v6 = vld [vmem:[%s290_s0 + $0x8] sm:$0xff]  ;;  %v19_v12 = vld [vmem:[%s290_s0 + $0x10] sm:$0xff] }
   0x2   :  { %v29_v1 = vld [vmem:[%s291_s1] sm:$0xff]  ;;  %v21_v3 = vadd.f32 1.0, %v17_v0  ;;  %v30_v7 = vld [vmem:[%s291_s1 + $0x8] sm:$0xff]  ;;  %v22_v9 = vadd.f32 1.0, %v18_v6  ;;  %v31_v13 = vld [vmem:[%s291_s1 + $0x10] sm:$0xff]  ;;  %v23_v17 = vadd.f32 1.0, %v19_v12 }
   0x3   :  { %v41_v2 = vld [vmem:[%s292_s2] sm:$0xff]  ;;  %v33_v4 = vadd.f32 1.0, %v29_v1  ;;  %v42_v8 = vld [vmem:[%s292_s2 + $0x8] sm:$0xff]  ;;  %v34_v10 = vadd.f32 1.0, %v30_v7  ;;  %v43_v18 = vld [vmem:[%s292_s2 + $0x10] sm:$0xff]  ;;  %v35_v23 = vadd.f32 1.0, %v31_v13 }
   0x4   :  { %v45_v5 = vadd.f32 1.0, %v41_v2  ;;  %v46_v11 = vadd.f32 1.0, %v42_v8  ;;  %v200_v14 = vmul.f32 127.5, %v21_v3  ;;  %v20_v19 = vld [vmem:[%s290_s0 + $0x18] sm:$0xff]  ;;  %v212_v20 = vmul.f32 127.5, %v22_v9 }
   0x5   :  { %v202_v15 = vmul.f32 127.5, %v33_v4  ;;  %v214_v21 = vmul.f32 127.5, %v34_v10  ;;  %v32_v24 = vld [vmem:[%s291_s1 + $0x18] sm:$0xff]  ;;  %v27_v33 = vmul.f32 127.5, %v23_v17  ;;  %v39_v34 = vmul.f32 127.5, %v35_v23 }
   0x6   :  { %v204_v16 = vmul.f32 127.5, %v45_v5  ;;  %v216_v22 = vmul.f32 127.5, %v46_v11  ;;  %v44_v25 = vld [vmem:[%s292_s2 + $0x18] sm:$0xff]  ;;  %v53_v26 = vmul.f32 0.299, %v200_v14  ;;  %v47_v35 = vadd.f32 1.0, %v43_v18 }
   0x7   :  { %v57_v27 = vmul.f32 0.587, %v202_v15  ;;  %v54_v29 = vmul.f32 0.299, %v212_v20  ;;  %v58_v30 = vmul.f32 0.587, %v214_v21 }
   0x8   :  { %v65_v28 = vmul.f32 0.114, %v204_v16  ;;  %v66_v31 = vmul.f32 0.114, %v216_v22  ;;  %v24_v37 = vadd.f32 1.0, %v20_v19  ;;  %v36_v38 = vadd.f32 1.0, %v32_v24 }
   0x9   :  { %v61_v32 = vadd.f32 %v57_v27, %v53_v26  ;;  %v62_v36 = vadd.f32 %v58_v30, %v54_v29  ;;  %v48_v39 = vadd.f32 1.0, %v44_v25  ;;  %v51_v41 = vmul.f32 127.5, %v47_v35 }
   0xa   :  { %v55_v42 = vmul.f32 0.299, %v27_v33  ;;  %v59_v43 = vmul.f32 0.587, %v39_v34  ;;  %v28_v45 = vmul.f32 127.5, %v24_v37  ;;  %v40_v46 = vmul.f32 127.5, %v36_v38 }
   0xb   :  { %v69_v40 = vadd.f32 %v65_v28, %v61_v32  ;;  %v70_v44 = vadd.f32 %v66_v31, %v62_v36  ;;  %v52_v47 = vmul.f32 127.5, %v48_v39  ;;  %v67_v49 = vmul.f32 0.114, %v51_v41 }
   0xc   :  { %v63_v48 = vadd.f32 %v59_v43, %v55_v42  ;;  %v78_v50 = vmul.f32 -0.168736, %v200_v14  ;;  %v82_v51 = vmul.f32 0.331264, %v202_v15  ;;  %v56_v52 = vmul.f32 0.299, %v28_v45 }
   0xd   :  { %74 = vst.msk [vmem:[%s293_s3] sm:$0xff] %vm73_vm0, %v69_v40  ;;  %75 = vst.msk [vmem:[%s293_s3 + $0x8] sm:$0xff] %vm73_vm0, %v70_v44  ;;  %v60_v53 = vmul.f32 0.587, %v40_v46  ;;  %v68_v54 = vmul.f32 0.114, %v52_v47 }
   0xe   :  { %v71_v55 = vadd.f32 %v67_v49, %v63_v48  ;;  %v86_v56 = vsub.f32 %v78_v50, %v82_v51  ;;  %v90_v57 = vmul.f32 0.5, %v204_v16  ;;  %v79_v58 = vmul.f32 -0.168736, %v212_v20 }
   0xf   :  { %v64_v59 = vadd.f32 %v60_v53, %v56_v52  ;;  %v83_v60 = vmul.f32 0.331264, %v214_v21  ;;  %v91_v61 = vmul.f32 0.5, %v216_v22  ;;  %v80_v62 = vmul.f32 -0.168736, %v27_v33 }
  0x10   :  { %76 = vst.msk [vmem:[%s293_s3 + $0x10] sm:$0xff] %vm73_vm0, %v71_v55  ;;  %v94_v63 = vadd.f32 %v90_v57, %v86_v56  ;;  %v84_v0 = vmul.f32 0.331264, %v39_v34  ;;  %v92_v1 = vmul.f32 0.5, %v51_v41  ;;  %v81_v2 = vmul.f32 -0.168736, %v28_v45 }
  0x11   :  { %v72_v3 = vadd.f32 %v68_v54, %v64_v59  ;;  %v87_v4 = vsub.f32 %v79_v58, %v83_v60  ;;  %v85_v5 = vmul.f32 0.331264, %v40_v46  ;;  %v93_v6 = vmul.f32 0.5, %v52_v47 }
  0x12   :  { %v98_v7 = vadd.f32 128.0, %v94_v63  ;;  %v88_v8 = vsub.f32 %v80_v62, %v84_v0  ;;  %v106_v9 = vmul.f32 0.5, %v200_v14  ;;  %v110_v10 = vmul.f32 0.418688, %v202_v15 }
  0x13   :  { %77 = vst.msk [vmem:[%s293_s3 + $0x18] sm:$0xff] %vm73_vm0, %v72_v3  ;;  %v95_v11 = vadd.f32 %v91_v61, %v87_v4  ;;  %v89_v12 = vsub.f32 %v81_v2, %v85_v5  ;;  %v118_v13 = vmul.f32 0.081312, %v204_v16  ;;  %v107_v17 = vmul.f32 0.5, %v212_v20 }
  0x14   :  { %102 = vst.msk [vmem:[%s294_s4] sm:$0xff] %vm73_vm0, %v98_v7  ;;  %v96_v18 = vadd.f32 %v92_v1, %v88_v8  ;;  %v114_v14 = vsub.f32 %v106_v9, %v110_v10  ;;  %v111_v15 = vmul.f32 0.418688, %v214_v21  ;;  %v119_v19 = vmul.f32 0.081312, %v216_v22 }
  0x15   :  { %v99_v23 = vadd.f32 128.0, %v95_v11  ;;  %v97_v24 = vadd.f32 %v93_v6, %v89_v12  ;;  %v108_v25 = vmul.f32 0.5, %v27_v33  ;;  %v112_v26 = vmul.f32 0.418688, %v39_v34 }
  0x16   :  { %v100_v27 = vadd.f32 128.0, %v96_v18  ;;  %v122_v28 = vsub.f32 %v114_v14, %v118_v13  ;;  %v115_v16 = vsub.f32 %v107_v17, %v111_v15  ;;  %v120_v29 = vmul.f32 0.081312, %v51_v41 }
  0x17   :  { %103 = vst.msk [vmem:[%s294_s4 + $0x8] sm:$0xff] %vm73_vm0, %v99_v23  ;;  %v101_v20 = vadd.f32 128.0, %v97_v24  ;;  %v116_v30 = vsub.f32 %v108_v25, %v112_v26  ;;  %v109_v31 = vmul.f32 0.5, %v28_v45  ;;  %v113_v32 = vmul.f32 0.418688, %v40_v46 }
  0x18   :  { %104 = vst.msk [vmem:[%s294_s4 + $0x10] sm:$0xff] %vm73_vm0, %v100_v27  ;;  %v126_v21 = vadd.f32 128.0, %v122_v28  ;;  %v123_v22 = vsub.f32 %v115_v16, %v119_v19  ;;  %v121_v33 = vmul.f32 0.081312, %v52_v47 }
  0x19   :  { %105 = vst.msk [vmem:[%s294_s4 + $0x18] sm:$0xff] %vm73_vm0, %v101_v20  ;;  %v124_v34 = vsub.f32 %v116_v30, %v120_v29  ;;  %v117_v35 = vsub.f32 %v109_v31, %v113_v32 }
  0x1a   :  { %130 = vst.msk [vmem:[%s295_s5] sm:$0xff] %vm73_vm0, %v126_v21  ;;  %v127_v36 = vadd.f32 128.0, %v123_v22 }
  0x1b   :  { %v128_v37 = vadd.f32 128.0, %v124_v34  ;;  %v125_v38 = vsub.f32 %v117_v35, %v121_v33 }
  0x1c   :  { %131 = vst.msk [vmem:[%s295_s5 + $0x8] sm:$0xff] %vm73_vm0, %v127_v36 }
  0x1d   :  { %132 = vst.msk [vmem:[%s295_s5 + $0x10] sm:$0xff] %vm73_vm0, %v128_v37  ;;  %v129_v39 = vadd.f32 128.0, %v125_v38 }
  0x1f   :  { %133 = vst.msk [vmem:[%s295_s5 + $0x18] sm:$0xff] %vm73_vm0, %v129_v39 }

// kernel: tile.14
= control target key start
LH: loop header
LB: loop body
LE: loop exit
PB: predicated region body
PF: predicated region fallthrough
CT: control target
= control target key end

     0   :  { %vm6_vm0 = vcmask 1043458   ;;  %vm10_vm1 = vcmask 1045508   ;;  %vm14_vm2 = vcmask 1047558   ;;  %s85_s6 = smov 3  ;;  %s88_s7 = smov 12  ;;  %vm16_vm3 = vcmask 15360   ;;  %s1472_s0 = inlined_call_operand.vmem [shape: f32[2,1,8,2,8,2], index: 0, kind: input, shape index: {}]   ;;  %s1473_s1 = inlined_call_operand.vmem [shape: f32[32,16], index: 1, kind: output, shape index: {}]  }
   0x1   :  { %v728_v0 = vld [vmem:[%s1472_s0 + $0xe] ss:$16 sm:%s85_s6]   ;;  %s93_s12 = smov 48  ;;  %s98_s13 = smov 192  ;;  %vm59_vm4 = vcmask 261360   ;;  %vm104_vm5 = vcmask 244960  }
   0x2   :  { %v729_v1 = vld [vmem:[%s1472_s0 + $0xe] ss:$16 sm:%s88_s7]   ;;  %s40_s18 = smov 3  ;;  %s43_s21 = smov 12  ;;  %vm149_vm6 = vcmask 228560   ;;  %vm194_vm7 = vcmask 212160  }
   0x3   :  { %v91_v2 = vsel %vm6_vm0, %v729_v1, %v728_v0  ;;  %v730_v3 = vld [vmem:[%s1472_s0 + $0xe] ss:$16 sm:%s93_s12]   ;;  %v719_v6 = vld [vmem:[%s1472_s0 + $0xf] ss:$16 sm:%s40_s18]   ;;  %s48_s22 = smov 48  ;;  %s53_s27 = smov 192 }
   0x4   :  { %v731_v4 = vld [vmem:[%s1472_s0 + $0xe] ss:$16 sm:%s98_s13]   ;;  %v96_v5 = vsel %vm10_vm1, %v730_v3, %v91_v2  ;;  %v720_v8 = vld [vmem:[%s1472_s0 + $0xf] ss:$16 sm:%s43_s21]   ;;  %s869_s28 = smov 28   ;;  %s107_s2 = smov 3 }
   0x5   :  { %v101_v7 = vsel %vm14_vm2, %v731_v4, %v96_v5  ;;  %v721_v9 = vld [vmem:[%s1472_s0 + $0xf] ss:$16 sm:%s48_s22]   ;;  %v46_v10 = vsel %vm6_vm0, %v720_v8, %v719_v6  ;;  %s110_s3 = smov 12  ;;  %v732_v13 = vld [vmem:[%s1472_s0 + $0x8e] ss:$16 sm:%s107_s2]   ;;  %s115_s8 = smov 48 }
   0x6   :  { %102 = vrot.lane.b32.xlu1 %v101_v7, %s869_s28  ;;  %v722_v11 = vld [vmem:[%s1472_s0 + $0xf] ss:$16 sm:%s53_s27]   ;;  %v51_v12 = vsel %vm10_vm1, %v721_v9, %v46_v10  ;;  %s120_s9 = smov 192  ;;  %s62_s14 = smov 3  ;;  %vm239_vm8 = vcmask 195760   ;;  %vm284_vm9 = vcmask 179360  }
   0x7   :  { %v733_v14 = vld [vmem:[%s1472_s0 + $0x8e] ss:$16 sm:%s110_s3]   ;;  %v56_v15 = vsel %vm14_vm2, %v722_v11, %v51_v12  ;;  %s65_s15 = smov 12  ;;  %s870_s16 = smov 30   ;;  %v723_v20 = vld [vmem:[%s1472_s0 + $0x8f] ss:$16 sm:%s62_s14]  }
   0x8   :  { %v113_v16 = vsel %vm6_vm0, %v733_v14, %v732_v13  ;;  %v734_v17 = vld [vmem:[%s1472_s0 + $0x8e] ss:$16 sm:%s115_s8]   ;;  %57 = vrot.lane.b32.xlu0 %v56_v15, %s870_s16  ;;  %s70_s19 = smov 48  ;;  %s75_s20 = smov 192  ;;  %vm329_vm10 = vcmask 162960   ;;  %vm374_vm11 = vcmask 146560  }
   0x9   :  { %v735_v18 = vld [vmem:[%s1472_s0 + $0x8e] ss:$16 sm:%s120_s9]   ;;  %v118_v19 = vsel %vm10_vm1, %v734_v17, %v113_v16  ;;  %v724_v22 = vld [vmem:[%s1472_s0 + $0x8f] ss:$16 sm:%s65_s15]   ;;  %s152_s25 = smov 3  ;;  %s160_s29 = smov 48 }
   0xa   :  { %v123_v21 = vsel %vm14_vm2, %v735_v18, %v118_v19  ;;  %v725_v23 = vld [vmem:[%s1472_s0 + $0x8f] ss:$16 sm:%s70_s19]   ;;  %v68_v24 = vsel %vm6_vm0, %v724_v22, %v723_v20  ;;  %v741_v27 = vld [vmem:[%s1472_s0 + $0x8d] ss:$16 sm:%s152_s25]   ;;  %s165_s5 = smov 192  ;;  %s130_s6 = smov 3 }
   0xb   :  { %124 = vrot.lane.b32.xlu1 %v123_v21, %s869_s28  ;;  %v726_v25 = vld [vmem:[%s1472_s0 + $0x8f] ss:$16 sm:%s75_s20]   ;;  %s155_s28 = smov 12  ;;  %v73_v26 = vsel %vm10_vm1, %v725_v23, %v68_v24  ;;  %s133_s11 = smov 12  ;;  %vm419_vm12 = vcmask 130160   ;;  %vm464_vm13 = vcmask 113760  }
   0xc   :  { %v742_v28 = vld [vmem:[%s1472_s0 + $0x8d] ss:$16 sm:%s155_s28]   ;;  %v78_v29 = vsel %vm14_vm2, %v726_v25, %v73_v26  ;;  %s138_s12 = smov 48  ;;  %s143_s15 = smov 192  ;;  %vm509_vm14 = vcmask 97360   ;;  %vm554_vm15 = vcmask 80960  }
   0xd   :  { %v158_v30 = vsel %vm6_vm0, %v742_v28, %v741_v27  ;;  %v743_v31 = vld [vmem:[%s1472_s0 + $0x8d] ss:$16 sm:%s160_s29]   ;;  %79 = vrot.lane.b32.xlu0 %v78_v29, %s870_s16  ;;  %s197_s20 = smov 3  ;;  %s200_s21 = smov 12 }
   0xe   :  { %v744_v32 = vld [vmem:[%s1472_s0 + $0x8d] ss:$16 sm:%s165_s5]   ;;  %v163_v33 = vsel %vm10_vm1, %v743_v31, %v158_v30  ;;  %s871_s22 = smov 26   ;;  %s205_s25 = smov 48  ;;  %v750_v41 = vld [vmem:[%s1472_s0 + $0x8c] ss:$16 sm:%s197_s20]  }
   0xf   :  { %v737_v34 = vld [vmem:[%s1472_s0 + $0xd] ss:$16 sm:%s130_s6]   ;;  %v168_v35 = vsel %vm14_vm2, %v744_v32, %v163_v33  ;;  %s210_s26 = smov 192  ;;  %v751_v42 = vld [vmem:[%s1472_s0 + $0x8c] ss:$16 sm:%s200_s21]   ;;  %s175_s2 = smov 3 }
  0x10   :  { %v738_v36 = vld [vmem:[%s1472_s0 + $0xd] ss:$16 sm:%s133_s11]   ;;  %169 = vrot.lane.b32.xlu1 %v168_v35, %s871_s22  ;;  %s178_s3 = smov 12  ;;  %v203_v44 = vsel %vm6_vm0, %v751_v42, %v750_v41  ;;  %s183_s8 = smov 48 }
  0x11   :  { %v739_v37 = vld [vmem:[%s1472_s0 + $0xd] ss:$16 sm:%s138_s12]   ;;  %v136_v38 = vsel %vm6_vm0, %v738_v36, %v737_v34  ;;  %v752_v45 = vld [vmem:[%s1472_s0 + $0x8c] ss:$16 sm:%s205_s25]   ;;  %s188_s9 = smov 192  ;;  %s242_s12 = smov 3 }
  0x12   :  { %v740_v39 = vld [vmem:[%s1472_s0 + $0xd] ss:$16 sm:%s143_s15]   ;;  %v141_v40 = vsel %vm10_vm1, %v739_v37, %v136_v38  ;;  %v753_v46 = vld [vmem:[%s1472_s0 + $0x8c] ss:$16 sm:%s210_s26]   ;;  %v208_v47 = vsel %vm10_vm1, %v752_v45, %v203_v44  ;;  %s245_s17 = smov 12  ;;  %s250_s18 = smov 48 }
  0x13   :  { %v146_v43 = vsel %vm14_vm2, %v740_v39, %v141_v40  ;;  %v746_v48 = vld [vmem:[%s1472_s0 + $0xc] ss:$16 sm:%s175_s2]   ;;  %v213_v49 = vsel %vm14_vm2, %v753_v46, %v208_v47  ;;  %s872_s19 = smov 24   ;;  %s220_s23 = smov 3  ;;  %v759_v55 = vld [vmem:[%s1472_s0 + $0x8b] ss:$16 sm:%s242_s12]  }
  0x14   :  { %147 = vrot.lane.b32.xlu0 %v146_v43, %s871_s22  ;;  %v747_v50 = vld [vmem:[%s1472_s0 + $0xc] ss:$16 sm:%s178_s3]   ;;  %214 = vrot.lane.b32.xlu1 %v213_v49, %s872_s19  ;;  %s255_s22 = smov 192  ;;  %s223_s28 = smov 12 }
  0x15   :  { %v748_v51 = vld [vmem:[%s1472_s0 + $0xc] ss:$16 sm:%s183_s8]   ;;  %v181_v52 = vsel %vm6_vm0, %v747_v50, %v746_v48  ;;  %v760_v56 = vld [vmem:[%s1472_s0 + $0x8b] ss:$16 sm:%s245_s17]   ;;  %s228_s29 = smov 48  ;;  %s233_s5 = smov 192 }
  0x16   :  { %v749_v53 = vld [vmem:[%s1472_s0 + $0xc] ss:$16 sm:%s188_s9]   ;;  %v186_v54 = vsel %vm10_vm1, %v748_v51, %v181_v52  ;;  %v248_v58 = vsel %vm6_vm0, %v760_v56, %v759_v55  ;;  %v761_v59 = vld [vmem:[%s1472_s0 + $0x8b] ss:$16 sm:%s250_s18]   ;;  %s287_s8 = smov 3  ;;  %s290_s9 = smov 12 }
  0x17   :  { %v191_v57 = vsel %vm14_vm2, %v749_v53, %v186_v54  ;;  %v762_v60 = vld [vmem:[%s1472_s0 + $0x8b] ss:$16 sm:%s255_s22]   ;;  %v253_v61 = vsel %vm10_vm1, %v761_v59, %v248_v58  ;;  %s295_s14 = smov 48  ;;  %s300_s15 = smov 192  ;;  %v768_v5 = vld [vmem:[%s1472_s0 + $0x8a] ss:$16 sm:%s287_s8]  }
  0x18   :  { %192 = vrot.lane.b32.xlu0 %v191_v57, %s872_s19  ;;  %v755_v62 = vld [vmem:[%s1472_s0 + $0xb] ss:$16 sm:%s220_s23]   ;;  %v258_v63 = vsel %vm14_vm2, %v762_v60, %v253_v61  ;;  %s873_s16 = smov 22   ;;  %s265_s19 = smov 3 }
  0x19   :  { %v756_v0 = vld [vmem:[%s1472_s0 + $0xb] ss:$16 sm:%s223_s28]   ;;  %259 = vrot.lane.b32.xlu1 %v258_v63, %s873_s16  ;;  %s268_s24 = smov 12  ;;  %s273_s25 = smov 48 }
  0x1a   :  { %v757_v1 = vld [vmem:[%s1472_s0 + $0xb] ss:$16 sm:%s228_s29]   ;;  %v226_v2 = vsel %vm6_vm0, %v756_v0, %v755_v62  ;;  %v769_v6 = vld [vmem:[%s1472_s0 + $0x8a] ss:$16 sm:%s290_s9]   ;;  %s278_s30 = smov 192  ;;  %s332_s4 = smov 3 }
  0x1b   :  { %v758_v3 = vld [vmem:[%s1472_s0 + $0xb] ss:$16 sm:%s233_s5]   ;;  %v231_v4 = vsel %vm10_vm1, %v757_v1, %v226_v2  ;;  %v293_v8 = vsel %vm6_vm0, %v769_v6, %v768_v5  ;;  %v770_v9 = vld [vmem:[%s1472_s0 + $0x8a] ss:$16 sm:%s295_s14]   ;;  %s335_s5 = smov 12  ;;  %s340_s10 = smov 48 }
  0x1c   :  { %v236_v7 = vsel %vm14_vm2, %v758_v3, %v231_v4  ;;  %v771_v10 = vld [vmem:[%s1472_s0 + $0x8a] ss:$16 sm:%s300_s15]   ;;  %v298_v11 = vsel %vm10_vm1, %v770_v9, %v293_v8  ;;  %s345_s11 = smov 192  ;;  %s874_s12 = smov 20   ;;  %v777_v19 = vld [vmem:[%s1472_s0 + $0x89] ss:$16 sm:%s332_s4]  }
  0x1d   :  { %237 = vrot.lane.b32.xlu0 %v236_v7, %s873_s16  ;;  %v764_v12 = vld [vmem:[%s1472_s0 + $0xa] ss:$16 sm:%s265_s19]   ;;  %v303_v13 = vsel %vm14_vm2, %v771_v10, %v298_v11  ;;  %s310_s15 = smov 3  ;;  %s313_s20 = smov 12 }
  0x1e   :  { %v765_v14 = vld [vmem:[%s1472_s0 + $0xa] ss:$16 sm:%s268_s24]   ;;  %304 = vrot.lane.b32.xlu1 %v303_v13, %s874_s12  ;;  %s318_s21 = smov 48  ;;  %s323_s26 = smov 192 }
  0x1f   :  { %v766_v15 = vld [vmem:[%s1472_s0 + $0xa] ss:$16 sm:%s273_s25]   ;;  %v271_v16 = vsel %vm6_vm0, %v765_v14, %v764_v12  ;;  %v778_v20 = vld [vmem:[%s1472_s0 + $0x89] ss:$16 sm:%s335_s5]   ;;  %s377_s29 = smov 3  ;;  %s385_s6 = smov 48 }
  0x20   :  { %v767_v17 = vld [vmem:[%s1472_s0 + $0xa] ss:$16 sm:%s278_s30]   ;;  %v276_v18 = vsel %vm10_vm1, %v766_v15, %v271_v16  ;;  %v338_v22 = vsel %vm6_vm0, %v778_v20, %v777_v19  ;;  %v779_v23 = vld [vmem:[%s1472_s0 + $0x89] ss:$16 sm:%s340_s10]   ;;  %s380_s30 = smov 12  ;;  %s390_s7 = smov 192 }
  0x21   :  { %v281_v21 = vsel %vm14_vm2, %v767_v17, %v276_v18  ;;  %v780_v24 = vld [vmem:[%s1472_s0 + $0x89] ss:$16 sm:%s345_s11]   ;;  %v343_v25 = vsel %vm10_vm1, %v779_v23, %v338_v22  ;;  %s875_s8 = smov 18   ;;  %s355_s11 = smov 3  ;;  %v786_v33 = vld [vmem:[%s1472_s0 + $0x88] ss:$16 sm:%s377_s29]  }
  0x22   :  { %282 = vrot.lane.b32.xlu0 %v281_v21, %s874_s12  ;;  %v773_v26 = vld [vmem:[%s1472_s0 + $0x9] ss:$16 sm:%s310_s15]   ;;  %v348_v27 = vsel %vm14_vm2, %v780_v24, %v343_v25  ;;  %s358_s16 = smov 12  ;;  %s363_s17 = smov 48 }
  0x23   :  { %v774_v28 = vld [vmem:[%s1472_s0 + $0x9] ss:$16 sm:%s313_s20]   ;;  %349 = vrot.lane.b32.xlu1 %v348_v27, %s875_s8  ;;  %s368_s22 = smov 192  ;;  %s422_s25 = smov 3 }
  0x24   :  { %v775_v29 = vld [vmem:[%s1472_s0 + $0x9] ss:$16 sm:%s318_s21]   ;;  %v316_v30 = vsel %vm6_vm0, %v774_v28, %v773_v26  ;;  %v787_v34 = vld [vmem:[%s1472_s0 + $0x88] ss:$16 sm:%s380_s30]   ;;  %s430_s2 = smov 48  ;;  %s435_s3 = smov 192 }
  0x25   :  { %v776_v31 = vld [vmem:[%s1472_s0 + $0x9] ss:$16 sm:%s323_s26]   ;;  %v321_v32 = vsel %vm10_vm1, %v775_v29, %v316_v30  ;;  %v383_v36 = vsel %vm6_vm0, %v787_v34, %v786_v33  ;;  %v788_v37 = vld [vmem:[%s1472_s0 + $0x88] ss:$16 sm:%s385_s6]   ;;  %s425_s26 = smov 12  ;;  %s876_s4 = smov 16  }
  0x26   :  { %v326_v35 = vsel %vm14_vm2, %v776_v31, %v321_v32  ;;  %v789_v38 = vld [vmem:[%s1472_s0 + $0x88] ss:$16 sm:%s390_s7]   ;;  %v388_v39 = vsel %vm10_vm1, %v788_v37, %v383_v36  ;;  %s400_s7 = smov 3  ;;  %v795_v47 = vld [vmem:[%s1472_s0 + $0x87] ss:$16 sm:%s422_s25]   ;;  %s403_s12 = smov 12 }
  0x27   :  { %327 = vrot.lane.b32.xlu0 %v326_v35, %s875_s8  ;;  %v782_v40 = vld [vmem:[%s1472_s0 + $0x8] ss:$16 sm:%s355_s11]   ;;  %v393_v41 = vsel %vm14_vm2, %v789_v38, %v388_v39  ;;  %s408_s13 = smov 48  ;;  %s413_s18 = smov 192 }
  0x28   :  { %v783_v42 = vld [vmem:[%s1472_s0 + $0x8] ss:$16 sm:%s358_s16]   ;;  %394 = vrot.lane.b32.xlu1 %v393_v41, %s876_s4  ;;  %s467_s21 = smov 3  ;;  %s475_s27 = smov 48 }
  0x29   :  { %v784_v43 = vld [vmem:[%s1472_s0 + $0x8] ss:$16 sm:%s363_s17]   ;;  %v361_v44 = vsel %vm6_vm0, %v783_v42, %v782_v40  ;;  %v796_v48 = vld [vmem:[%s1472_s0 + $0x87] ss:$16 sm:%s425_s26]   ;;  %s480_s28 = smov 192  ;;  %s877_s29 = smov 14  }
  0x2a   :  { %v785_v45 = vld [vmem:[%s1472_s0 + $0x8] ss:$16 sm:%s368_s22]   ;;  %v366_v46 = vsel %vm10_vm1, %v784_v43, %v361_v44  ;;  %v428_v50 = vsel %vm6_vm0, %v796_v48, %v795_v47  ;;  %v797_v51 = vld [vmem:[%s1472_s0 + $0x87] ss:$16 sm:%s430_s2]   ;;  %s470_s22 = smov 12  ;;  %s448_s8 = smov 12 }
  0x2b   :  { %v371_v49 = vsel %vm14_vm2, %v785_v45, %v366_v46  ;;  %v798_v52 = vld [vmem:[%s1472_s0 + $0x87] ss:$16 sm:%s435_s3]   ;;  %v433_v53 = vsel %vm10_vm1, %v797_v51, %v428_v50  ;;  %s445_s3 = smov 3  ;;  %v804_v61 = vld [vmem:[%s1472_s0 + $0x86] ss:$16 sm:%s467_s21]   ;;  %s453_s9 = smov 48 }
  0x2c   :  { %372 = vrot.lane.b32.xlu0 %v371_v49, %s876_s4  ;;  %v791_v54 = vld [vmem:[%s1472_s0 + $0x7] ss:$16 sm:%s400_s7]   ;;  %v438_v55 = vsel %vm14_vm2, %v798_v52, %v433_v53  ;;  %s458_s14 = smov 192  ;;  %s512_s17 = smov 3 }
  0x2d   :  { %v792_v56 = vld [vmem:[%s1472_s0 + $0x7] ss:$16 sm:%s403_s12]   ;;  %439 = vrot.lane.b32.xlu1 %v438_v55, %s877_s29  ;;  %s520_s23 = smov 48  ;;  %s525_s24 = smov 192 }
  0x2e   :  { %v793_v57 = vld [vmem:[%s1472_s0 + $0x7] ss:$16 sm:%s408_s13]   ;;  %v406_v58 = vsel %vm6_vm0, %v792_v56, %v791_v54  ;;  %v805_v62 = vld [vmem:[%s1472_s0 + $0x86] ss:$16 sm:%s470_s22]   ;;  %s878_s25 = smov 12   ;;  %s493_s4 = smov 12 }
  0x2f   :  { %v794_v59 = vld [vmem:[%s1472_s0 + $0x7] ss:$16 sm:%s413_s18]   ;;  %v411_v60 = vsel %vm10_vm1, %v793_v57, %v406_v58  ;;  %v473_v0 = vsel %vm6_vm0, %v805_v62, %v804_v61  ;;  %v806_v1 = vld [vmem:[%s1472_s0 + $0x86] ss:$16 sm:%s475_s27]   ;;  %s515_s18 = smov 12  ;;  %s498_s5 = smov 48 }
  0x30   :  { %v416_v63 = vsel %vm14_vm2, %v794_v59, %v411_v60  ;;  %v807_v2 = vld [vmem:[%s1472_s0 + $0x86] ss:$16 sm:%s480_s28]   ;;  %v478_v3 = vsel %vm10_vm1, %v806_v1, %v473_v0  ;;  %s490_s28 = smov 3  ;;  %v813_v11 = vld [vmem:[%s1472_s0 + $0x85] ss:$16 sm:%s512_s17]   ;;  %s503_s10 = smov 192 }
  0x31   :  { %417 = vrot.lane.b32.xlu0 %v416_v63, %s877_s29  ;;  %v800_v4 = vld [vmem:[%s1472_s0 + $0x6] ss:$16 sm:%s445_s3]   ;;  %v483_v5 = vsel %vm14_vm2, %v807_v2, %v478_v3  ;;  %s557_s13 = smov 3  ;;  %s565_s19 = smov 48 }
  0x32   :  { %v801_v6 = vld [vmem:[%s1472_s0 + $0x6] ss:$16 sm:%s448_s8]   ;;  %484 = vrot.lane.b32.xlu1 %v483_v5, %s878_s25  ;;  %s570_s20 = smov 192  ;;  %s879_s21 = smov 10  }
  0x33   :  { %v802_v7 = vld [vmem:[%s1472_s0 + $0x6] ss:$16 sm:%s453_s9]   ;;  %v451_v8 = vsel %vm6_vm0, %v801_v6, %v800_v4  ;;  %v814_v12 = vld [vmem:[%s1472_s0 + $0x85] ss:$16 sm:%s515_s18]   ;;  %s538_s29 = smov 12  ;;  %s543_s30 = smov 48 }
  0x34   :  { %v803_v9 = vld [vmem:[%s1472_s0 + $0x6] ss:$16 sm:%s458_s14]   ;;  %v456_v10 = vsel %vm10_vm1, %v802_v7, %v451_v8  ;;  %v518_v14 = vsel %vm6_vm0, %v814_v12, %v813_v11  ;;  %v815_v15 = vld [vmem:[%s1472_s0 + $0x85] ss:$16 sm:%s520_s23]   ;;  %s560_s14 = smov 12  ;;  %s548_s6 = smov 192 }
  0x35   :  { %v461_v13 = vsel %vm14_vm2, %v803_v9, %v456_v10  ;;  %v816_v16 = vld [vmem:[%s1472_s0 + $0x85] ss:$16 sm:%s525_s24]   ;;  %v523_v17 = vsel %vm10_vm1, %v815_v15, %v518_v14  ;;  %s535_s24 = smov 3  ;;  %v822_v25 = vld [vmem:[%s1472_s0 + $0x84] ss:$16 sm:%s557_s13]   ;;  %s602_s9 = smov 3 }
  0x36   :  { %462 = vrot.lane.b32.xlu0 %v461_v13, %s878_s25  ;;  %v809_v18 = vld [vmem:[%s1472_s0 + $0x5] ss:$16 sm:%s490_s28]   ;;  %v528_v19 = vsel %vm14_vm2, %v816_v16, %v523_v17  ;;  %s610_s15 = smov 48  ;;  %s615_s16 = smov 192 }
  0x37   :  { %v810_v20 = vld [vmem:[%s1472_s0 + $0x5] ss:$16 sm:%s493_s4]   ;;  %529 = vrot.lane.b32.xlu1 %v528_v19, %s879_s21  ;;  %s880_s17 = smov 8   ;;  %s583_s25 = smov 12 }
  0x38   :  { %v811_v21 = vld [vmem:[%s1472_s0 + $0x5] ss:$16 sm:%s498_s5]   ;;  %v496_v22 = vsel %vm6_vm0, %v810_v20, %v809_v18  ;;  %v823_v26 = vld [vmem:[%s1472_s0 + $0x84] ss:$16 sm:%s560_s14]   ;;  %s588_s26 = smov 48  ;;  %s593_s2 = smov 192 }
  0x39   :  { %v812_v23 = vld [vmem:[%s1472_s0 + $0x5] ss:$16 sm:%s503_s10]   ;;  %v501_v24 = vsel %vm10_vm1, %v811_v21, %v496_v22  ;;  %v563_v28 = vsel %vm6_vm0, %v823_v26, %v822_v25  ;;  %v824_v29 = vld [vmem:[%s1472_s0 + $0x84] ss:$16 sm:%s565_s19]   ;;  %s605_s10 = smov 12  ;;  %s647_s5 = smov 3 }
  0x3a   :  { %v506_v27 = vsel %vm14_vm2, %v812_v23, %v501_v24  ;;  %v825_v30 = vld [vmem:[%s1472_s0 + $0x84] ss:$16 sm:%s570_s20]   ;;  %v568_v31 = vsel %vm10_vm1, %v824_v29, %v563_v28  ;;  %s580_s20 = smov 3  ;;  %v831_v39 = vld [vmem:[%s1472_s0 + $0x83] ss:$16 sm:%s602_s9]   ;;  %s655_s11 = smov 48 }
  0x3b   :  { %507 = vrot.lane.b32.xlu0 %v506_v27, %s879_s21  ;;  %v818_v32 = vld [vmem:[%s1472_s0 + $0x4] ss:$16 sm:%s535_s24]   ;;  %v573_v33 = vsel %vm14_vm2, %v825_v30, %v568_v31  ;;  %s660_s12 = smov 192  ;;  %s881_s13 = smov 6  }
  0x3c   :  { %v819_v34 = vld [vmem:[%s1472_s0 + $0x4] ss:$16 sm:%s538_s29]   ;;  %574 = vrot.lane.b32.xlu1 %v573_v33, %s880_s17  ;;  %s628_s21 = smov 12  ;;  %s633_s22 = smov 48 }
  0x3d   :  { %v820_v35 = vld [vmem:[%s1472_s0 + $0x4] ss:$16 sm:%s543_s30]   ;;  %v541_v36 = vsel %vm6_vm0, %v819_v34, %v818_v32  ;;  %v832_v40 = vld [vmem:[%s1472_s0 + $0x83] ss:$16 sm:%s605_s10]   ;;  %s638_s27 = smov 192  ;;  %s692_s30 = smov 3 }
  0x3e   :  { %v821_v37 = vld [vmem:[%s1472_s0 + $0x4] ss:$16 sm:%s548_s6]   ;;  %v546_v38 = vsel %vm10_vm1, %v820_v35, %v541_v36  ;;  %v608_v42 = vsel %vm6_vm0, %v832_v40, %v831_v39  ;;  %v833_v43 = vld [vmem:[%s1472_s0 + $0x83] ss:$16 sm:%s610_s15]   ;;  %s650_s6 = smov 12  ;;  %s700_s7 = smov 48 }
  0x3f   :  { %v551_v41 = vsel %vm14_vm2, %v821_v37, %v546_v38  ;;  %v834_v44 = vld [vmem:[%s1472_s0 + $0x83] ss:$16 sm:%s615_s16]   ;;  %v613_v45 = vsel %vm10_vm1, %v833_v43, %v608_v42  ;;  %s625_s16 = smov 3  ;;  %v840_v53 = vld [vmem:[%s1472_s0 + $0x82] ss:$16 sm:%s647_s5]   ;;  %s705_s8 = smov 192 }
  0x40   :  { %552 = vrot.lane.b32.xlu0 %v551_v41, %s880_s17  ;;  %v827_v46 = vld [vmem:[%s1472_s0 + $0x3] ss:$16 sm:%s580_s20]   ;;  %v618_v47 = vsel %vm14_vm2, %v834_v44, %v613_v45  ;;  %s882_s9 = smov 4   ;;  %s673_s17 = smov 12 }
  0x41   :  { %v828_v48 = vld [vmem:[%s1472_s0 + $0x3] ss:$16 sm:%s583_s25]   ;;  %619 = vrot.lane.b32.xlu1 %v618_v47, %s881_s13  ;;  %s678_s18 = smov 48  ;;  %s683_s23 = smov 192 }
  0x42   :  { %v829_v49 = vld [vmem:[%s1472_s0 + $0x3] ss:$16 sm:%s588_s26]   ;;  %v586_v50 = vsel %vm6_vm0, %v828_v48, %v827_v46  ;;  %v841_v54 = vld [vmem:[%s1472_s0 + $0x82] ss:$16 sm:%s650_s6]   ;;  %s2_s26 = smov 3  ;;  %s8_s3 = smov 48 }
  0x43   :  { %v830_v51 = vld [vmem:[%s1472_s0 + $0x3] ss:$16 sm:%s593_s2]   ;;  %v591_v52 = vsel %vm10_vm1, %v829_v49, %v586_v50  ;;  %v653_v56 = vsel %vm6_vm0, %v841_v54, %v840_v53  ;;  %v842_v57 = vld [vmem:[%s1472_s0 + $0x82] ss:$16 sm:%s655_s11]   ;;  %s695_s2 = smov 12  ;;  %s12_s4 = smov 192 }
  0x44   :  { %v596_v55 = vsel %vm14_vm2, %v830_v51, %v591_v52  ;;  %v843_v58 = vld [vmem:[%s1472_s0 + $0x82] ss:$16 sm:%s660_s12]   ;;  %v658_v59 = vsel %vm10_vm1, %v842_v57, %v653_v56  ;;  %s670_s12 = smov 3  ;;  %v849_v3 = vld [vmem:[%s1472_s0 + $0x81] ss:$16 sm:%s692_s30]   ;;  %s883_s5 = smov 2  }
  0x45   :  { %597 = vrot.lane.b32.xlu0 %v596_v55, %s881_s13  ;;  %v836_v60 = vld [vmem:[%s1472_s0 + $0x2] ss:$16 sm:%s625_s16]   ;;  %v663_v61 = vsel %vm14_vm2, %v843_v58, %v658_v59  ;;  %s22_s13 = smov 12  ;;  %s27_s14 = smov 48 }
  0x46   :  { %v837_v62 = vld [vmem:[%s1472_s0 + $0x2] ss:$16 sm:%s628_s21]   ;;  %664 = vrot.lane.b32.xlu1 %v663_v61, %s882_s9  ;;  %s32_s19 = smov 192 }
  0x47   :  { %v838_v63 = vld [vmem:[%s1472_s0 + $0x2] ss:$16 sm:%s633_s22]   ;;  %v631_v0 = vsel %vm6_vm0, %v837_v62, %v836_v60  ;;  %v850_v4 = vld [vmem:[%s1472_s0 + $0x81] ss:$16 sm:%s695_s2]  }
  0x48   :  { %v839_v1 = vld [vmem:[%s1472_s0 + $0x2] ss:$16 sm:%s638_s27]   ;;  %v636_v2 = vsel %vm10_vm1, %v838_v63, %v631_v0  ;;  %v698_v6 = vsel %vm6_vm0, %v850_v4, %v849_v3  ;;  %v851_v7 = vld [vmem:[%s1472_s0 + $0x81] ss:$16 sm:%s700_s7]   ;;  %s4_s27 = smov 12 }
  0x49   :  { %v641_v5 = vsel %vm14_vm2, %v839_v1, %v636_v2  ;;  %v852_v8 = vld [vmem:[%s1472_s0 + $0x81] ss:$16 sm:%s705_s8]   ;;  %v703_v9 = vsel %vm10_vm1, %v851_v7, %v698_v6  ;;  %s19_s8 = smov 3  ;;  %v3_v17 = vld [vmem:[%s1472_s0] ss:$16 sm:%s2_s26]  }
  0x4a   :  { %642 = vrot.lane.b32.xlu0 %v641_v5, %s882_s9  ;;  %v845_v10 = vld [vmem:[%s1472_s0 + $0x1] ss:$16 sm:%s670_s12]   ;;  %v708_v11 = vsel %vm14_vm2, %v852_v8, %v703_v9 }
  0x4b   :  { %v846_v12 = vld [vmem:[%s1472_s0 + $0x1] ss:$16 sm:%s673_s17]   ;;  %709 = vrot.lane.b32.xlu1 %v708_v11, %s883_s5 }
  0x4c   :  { %v847_v13 = vld [vmem:[%s1472_s0 + $0x1] ss:$16 sm:%s678_s18]   ;;  %v676_v14 = vsel %vm6_vm0, %v846_v12, %v845_v10  ;;  %v5_v18 = vld [vmem:[%s1472_s0] ss:$16 sm:%s4_s27]  }
  0x4d   :  { %v848_v15 = vld [vmem:[%s1472_s0 + $0x1] ss:$16 sm:%s683_s23]   ;;  %v681_v16 = vsel %vm10_vm1, %v847_v13, %v676_v14  ;;  %v7_v20 = vsel %vm6_vm0, %v5_v18, %v3_v17  ;;  %v9_v21 = vld [vmem:[%s1472_s0] ss:$16 sm:%s8_s3]  }
  0x4e   :  { %v686_v19 = vsel %vm14_vm2, %v848_v15, %v681_v16  ;;  %v13_v22 = vld [vmem:[%s1472_s0] ss:$16 sm:%s12_s4]   ;;  %v11_v23 = vsel %vm10_vm1, %v9_v21, %v7_v20 }
  0x4f   :  { %687 = vrot.lane.b32.xlu0 %v686_v19, %s883_s5  ;;  %v714_v24 = vld [vmem:[%s1472_s0 + $0x80] ss:$16 sm:%s19_s8]   ;;  %v15_v25 = vsel %vm14_vm2, %v13_v22, %v11_v23 }
  0x50   :  { %v715_v26 = vld [vmem:[%s1472_s0 + $0x80] ss:$16 sm:%s22_s13]   ;;  %17 = vst.msk [vmem:[%s1473_s1] sm:$0xff] %vm16_vm3, %v15_v25  }
  0x51   :  { %v716_v27 = vld [vmem:[%s1472_s0 + $0x80] ss:$16 sm:%s27_s14]   ;;  %v25_v28 = vsel %vm6_vm0, %v715_v26, %v714_v24  ;;  %vm599_vm0 = vcmask 64560  }
  0x52   :  { %v717_v29 = vld [vmem:[%s1472_s0 + $0x80] ss:$16 sm:%s32_s19]   ;;  %v30_v30 = vsel %vm10_vm1, %v716_v27, %v25_v28  ;;  %vm644_vm1 = vcmask 48160  }
  0x53   :  { %v35_v31 = vsel %vm14_vm2, %v717_v29, %v30_v30  ;;  %vm689_vm2 = vcmask 31760  }
  0x54   :  { %718 = vst.msk [vmem:[%s1473_s1 + $0x8] sm:$0xff] %vm16_vm3, %v35_v31  }
  0x78   :  { %v103_v32 = vpop.permute.xlu1 %102  }
  0x7a   :  { %v58_v33 = vpop.permute.xlu0 %57  }
  0x7b   :  { %60 = vst.msk [vmem:[%s1473_s1] sm:$0xff] %vm59_vm4, %v58_v33  }
  0x7c   :  { %105 = vst.msk [vmem:[%s1473_s1] sm:$0xff] %vm104_vm5, %v103_v32  }
  0x7d   :  { %v125_v34 = vpop.permute.xlu1 %124  }
  0x7f   :  { %v80_v35 = vpop.permute.xlu0 %79  }
  0x80   :  { %727 = vst.msk [vmem:[%s1473_s1 + $0x8] sm:$0xff] %vm59_vm4, %v80_v35  }
  0x81   :  { %736 = vst.msk [vmem:[%s1473_s1 + $0x8] sm:$0xff] %vm104_vm5, %v125_v34  }
  0x82   :  { %v170_v36 = vpop.permute.xlu1 %169  }
  0x83   :  { %745 = vst.msk [vmem:[%s1473_s1 + $0x8] sm:$0xff] %vm149_vm6, %v170_v36  }
  0x86   :  { %v148_v37 = vpop.permute.xlu0 %147   ;;  %v215_v38 = vpop.permute.xlu1 %214  }
  0x87   :  { %150 = vst.msk [vmem:[%s1473_s1] sm:$0xff] %vm149_vm6, %v148_v37  }
  0x88   :  { %754 = vst.msk [vmem:[%s1473_s1 + $0x8] sm:$0xff] %vm194_vm7, %v215_v38  }
  0x8a   :  { %v193_v39 = vpop.permute.xlu0 %192  }
  0x8b   :  { %195 = vst.msk [vmem:[%s1473_s1] sm:$0xff] %vm194_vm7, %v193_v39   ;;  %v260_v40 = vpop.permute.xlu1 %259  }
  0x8c   :  { %763 = vst.msk [vmem:[%s1473_s1 + $0x8] sm:$0xff] %vm239_vm8, %v260_v40  }
  0x8f   :  { %v238_v41 = vpop.permute.xlu0 %237  }
  0x90   :  { %240 = vst.msk [vmem:[%s1473_s1] sm:$0xff] %vm239_vm8, %v238_v41   ;;  %v305_v42 = vpop.permute.xlu1 %304  }
  0x91   :  { %772 = vst.msk [vmem:[%s1473_s1 + $0x8] sm:$0xff] %vm284_vm9, %v305_v42  }
  0x94   :  { %v283_v43 = vpop.permute.xlu0 %282  }
  0x95   :  { %285 = vst.msk [vmem:[%s1473_s1] sm:$0xff] %vm284_vm9, %v283_v43   ;;  %v350_v44 = vpop.permute.xlu1 %349  }
  0x96   :  { %781 = vst.msk [vmem:[%s1473_s1 + $0x8] sm:$0xff] %vm329_vm10, %v350_v44  }
  0x99   :  { %v328_v45 = vpop.permute.xlu0 %327  }
  0x9a   :  { %330 = vst.msk [vmem:[%s1473_s1] sm:$0xff] %vm329_vm10, %v328_v45   ;;  %v395_v46 = vpop.permute.xlu1 %394  }
  0x9b   :  { %790 = vst.msk [vmem:[%s1473_s1 + $0x8] sm:$0xff] %vm374_vm11, %v395_v46  }
  0x9e   :  { %v373_v47 = vpop.permute.xlu0 %372  }
  0x9f   :  { %375 = vst.msk [vmem:[%s1473_s1] sm:$0xff] %vm374_vm11, %v373_v47   ;;  %v440_v48 = vpop.permute.xlu1 %439  }
  0xa0   :  { %799 = vst.msk [vmem:[%s1473_s1 + $0x8] sm:$0xff] %vm419_vm12, %v440_v48  }
  0xa3   :  { %v418_v49 = vpop.permute.xlu0 %417  }
  0xa4   :  { %420 = vst.msk [vmem:[%s1473_s1] sm:$0xff] %vm419_vm12, %v418_v49   ;;  %v485_v50 = vpop.permute.xlu1 %484  }
  0xa5   :  { %808 = vst.msk [vmem:[%s1473_s1 + $0x8] sm:$0xff] %vm464_vm13, %v485_v50  }
  0xa8   :  { %v463_v51 = vpop.permute.xlu0 %462  }
  0xa9   :  { %465 = vst.msk [vmem:[%s1473_s1] sm:$0xff] %vm464_vm13, %v463_v51   ;;  %v530_v52 = vpop.permute.xlu1 %529  }
  0xaa   :  { %817 = vst.msk [vmem:[%s1473_s1 + $0x8] sm:$0xff] %vm509_vm14, %v530_v52  }
  0xad   :  { %v508_v53 = vpop.permute.xlu0 %507  }
  0xae   :  { %510 = vst.msk [vmem:[%s1473_s1] sm:$0xff] %vm509_vm14, %v508_v53   ;;  %v575_v54 = vpop.permute.xlu1 %574  }
  0xaf   :  { %826 = vst.msk [vmem:[%s1473_s1 + $0x8] sm:$0xff] %vm554_vm15, %v575_v54  }
  0xb2   :  { %v553_v55 = vpop.permute.xlu0 %552  }
  0xb3   :  { %555 = vst.msk [vmem:[%s1473_s1] sm:$0xff] %vm554_vm15, %v553_v55   ;;  %v620_v56 = vpop.permute.xlu1 %619  }
  0xb4   :  { %835 = vst.msk [vmem:[%s1473_s1 + $0x8] sm:$0xff] %vm599_vm0, %v620_v56  }
  0xb7   :  { %v598_v57 = vpop.permute.xlu0 %597  }
  0xb8   :  { %600 = vst.msk [vmem:[%s1473_s1] sm:$0xff] %vm599_vm0, %v598_v57   ;;  %v665_v58 = vpop.permute.xlu1 %664  }
  0xb9   :  { %844 = vst.msk [vmem:[%s1473_s1 + $0x8] sm:$0xff] %vm644_vm1, %v665_v58  }
  0xbc   :  { %v643_v59 = vpop.permute.xlu0 %642  }
  0xbd   :  { %645 = vst.msk [vmem:[%s1473_s1] sm:$0xff] %vm644_vm1, %v643_v59   ;;  %v710_v60 = vpop.permute.xlu1 %709  }
  0xbe   :  { %853 = vst.msk [vmem:[%s1473_s1 + $0x8] sm:$0xff] %vm689_vm2, %v710_v60  }
  0xc1   :  { %v688_v61 = vpop.permute.xlu0 %687  }
  0xc2   :  { %690 = vst.msk [vmem:[%s1473_s1] sm:$0xff] %vm689_vm2, %v688_v61  }

// kernel: diff_jpeg.6
= control target key start
LH: loop header
LB: loop body
LE: loop exit
PB: predicated region body
PF: predicated region fallthrough
CT: control target
= control target key end

     0   :  { %v313_v0 = vmov 0.0   ;;  %vm314_vm0 = vmmov 0   ;;  %s471_s1 = inlined_call_operand.vmem [shape: f32[128,128], index: 1, kind: input, shape index: {}]   ;;  %s472_s2 = inlined_call_operand.vmem [shape: f32[128,128], index: 2, kind: input, shape index: {}]   ;;  %s473_s0 = inlined_call_operand.vmem [shape: f32[8,128], index: 0, kind: input, shape index: {}]   ;;  %s474_s3 = inlined_call_operand.vmem [shape: f32[8,128], index: 3, kind: output, shape index: {}]  }
   0x1   :  { %233 = vmatprep.subr.mxu0 %v313_v0  ;;  %v31_v1 = vld [vmem:[%s471_s1 + $0x78] sm:$0xff]  ;;  %v30_v2 = vld [vmem:[%s471_s1 + $0x70] sm:$0xff]  ;;  %265 = vmatprep.mubr.msk.f32.mxu0 %vm314_vm0, %v313_v0  ;;  %v29_v3 = vld [vmem:[%s471_s1 + $0x68] sm:$0xff] }
   0x2   :  { %234 = vmatpush3.msra.mxu0 %v31_v1  ;;  %268 = vmatprep.subr.mxu1 %v313_v0  ;;  %v28_v4 = vld [vmem:[%s471_s1 + $0x60] sm:$0xff]  ;;  %v122_v5 = vld [vmem:[%s472_s2 + $0x78] sm:$0xff]  ;;  %v121_v7 = vld [vmem:[%s472_s2 + $0x70] sm:$0xff] }
   0x3   :  { %235 = vmatprep.subr.mxu0 %v313_v0  ;;  %300 = vmatprep.mubr.msk.f32.mxu1 %vm314_vm0, %v313_v0  ;;  %v27_v6 = vld [vmem:[%s471_s1 + $0x58] sm:$0xff]  ;;  %v120_v8 = vld [vmem:[%s472_s2 + $0x68] sm:$0xff]  ;;  %v26_v9 = vld [vmem:[%s471_s1 + $0x50] sm:$0xff] }
   0x4   :  { %236 = vmatpush3.msra.mxu0 %v30_v2  ;;  %269 = vmatpush3.msra.mxu1 %v122_v5  ;;  %v119_v10 = vld [vmem:[%s472_s2 + $0x60] sm:$0xff]  ;;  %v25_v11 = vld [vmem:[%s471_s1 + $0x48] sm:$0xff]  ;;  %v118_v12 = vld [vmem:[%s472_s2 + $0x58] sm:$0xff] }
   0x5   :  { %237 = vmatprep.subr.mxu0 %v313_v0  ;;  %270 = vmatprep.subr.mxu1 %v313_v0  ;;  %v24_v13 = vld [vmem:[%s471_s1 + $0x40] sm:$0xff]  ;;  %v117_v14 = vld [vmem:[%s472_s2 + $0x50] sm:$0xff]  ;;  %v23_v15 = vld [vmem:[%s471_s1 + $0x38] sm:$0xff] }
   0x6   :  { %238 = vmatpush3.msra.mxu0 %v29_v3  ;;  %271 = vmatpush3.msra.mxu1 %v121_v7  ;;  %v116_v16 = vld [vmem:[%s472_s2 + $0x48] sm:$0xff]  ;;  %v22_v17 = vld [vmem:[%s471_s1 + $0x30] sm:$0xff]  ;;  %v20_v19 = vld [vmem:[%s471_s1 + $0x20] sm:$0xff] }
   0x7   :  { %239 = vmatprep.subr.mxu0 %v313_v0  ;;  %272 = vmatprep.subr.mxu1 %v313_v0  ;;  %v21_v18 = vld [vmem:[%s471_s1 + $0x28] sm:$0xff]  ;;  %v19_v20 = vld [vmem:[%s471_s1 + $0x18] sm:$0xff]  ;;  %v18_v21 = vld [vmem:[%s471_s1 + $0x10] sm:$0xff] }
   0x8   :  { %240 = vmatpush3.msra.mxu0 %v28_v4  ;;  %273 = vmatpush3.msra.mxu1 %v120_v8  ;;  %v14_v22 = vld [vmem:[%s473_s0] sm:$0xff]  ;;  %v17_v23 = vld [vmem:[%s471_s1 + $0x8] sm:$0xff]  ;;  %v114_v27 = vld [vmem:[%s472_s2 + $0x38] sm:$0xff] }
   0x9   :  { %241 = vmatprep.subr.mxu0 %v313_v0  ;;  %274 = vmatprep.subr.mxu1 %v313_v0  ;;  %v16_v24 = vld [vmem:[%s471_s1] sm:$0xff]  ;;  %v198_v25 = vadd.f32 -128.0, %v14_v22  ;;  %v113_v28 = vld [vmem:[%s472_s2 + $0x30] sm:$0xff]  ;;  %v112_v29 = vld [vmem:[%s472_s2 + $0x28] sm:$0xff] }
   0xa   :  { %242 = vmatpush3.msra.mxu0 %v27_v6  ;;  %275 = vmatpush3.msra.mxu1 %v119_v10  ;;  %v115_v26 = vld [vmem:[%s472_s2 + $0x40] sm:$0xff]  ;;  %v110_v31 = vld [vmem:[%s472_s2 + $0x18] sm:$0xff]  ;;  %v109_v32 = vld [vmem:[%s472_s2 + $0x10] sm:$0xff] }
   0xb   :  { %243 = vmatprep.subr.mxu0 %v313_v0  ;;  %276 = vmatprep.subr.mxu1 %v313_v0  ;;  %v111_v30 = vld [vmem:[%s472_s2 + $0x20] sm:$0xff]  ;;  %v108_v33 = vld [vmem:[%s472_s2 + $0x8] sm:$0xff] }
   0xc   :  { %244 = vmatpush3.msra.mxu0 %v26_v9  ;;  %277 = vmatpush3.msra.mxu1 %v118_v12  ;;  %v107_v34 = vld [vmem:[%s472_s2] sm:$0xff] }
   0xd   :  { %245 = vmatprep.subr.mxu0 %v313_v0  ;;  %278 = vmatprep.subr.mxu1 %v313_v0 }
   0xe   :  { %246 = vmatpush3.msra.mxu0 %v25_v11  ;;  %279 = vmatpush3.msra.mxu1 %v117_v14 }
   0xf   :  { %247 = vmatprep.subr.mxu0 %v313_v0  ;;  %280 = vmatprep.subr.mxu1 %v313_v0 }
  0x10   :  { %248 = vmatpush3.msra.mxu0 %v24_v13  ;;  %281 = vmatpush3.msra.mxu1 %v116_v16 }
  0x11   :  { %249 = vmatprep.subr.mxu0 %v313_v0  ;;  %282 = vmatprep.subr.mxu1 %v313_v0 }
  0x12   :  { %250 = vmatpush3.msra.mxu0 %v23_v15  ;;  %283 = vmatpush3.msra.mxu1 %v115_v26 }
  0x13   :  { %251 = vmatprep.subr.mxu0 %v313_v0  ;;  %284 = vmatprep.subr.mxu1 %v313_v0 }
  0x14   :  { %252 = vmatpush3.msra.mxu0 %v22_v17  ;;  %285 = vmatpush3.msra.mxu1 %v114_v27 }
  0x15   :  { %253 = vmatprep.subr.mxu0 %v313_v0  ;;  %286 = vmatprep.subr.mxu1 %v313_v0 }
  0x16   :  { %254 = vmatpush3.msra.mxu0 %v21_v18  ;;  %287 = vmatpush3.msra.mxu1 %v113_v28 }
  0x17   :  { %255 = vmatprep.subr.mxu0 %v313_v0  ;;  %288 = vmatprep.subr.mxu1 %v313_v0 }
  0x18   :  { %256 = vmatpush3.msra.mxu0 %v20_v19  ;;  %289 = vmatpush3.msra.mxu1 %v112_v29 }
  0x19   :  { %257 = vmatprep.subr.mxu0 %v313_v0  ;;  %290 = vmatprep.subr.mxu1 %v313_v0 }
  0x1a   :  { %258 = vmatpush3.msra.mxu0 %v19_v20  ;;  %291 = vmatpush3.msra.mxu1 %v111_v30 }
  0x1b   :  { %259 = vmatprep.subr.mxu0 %v313_v0  ;;  %292 = vmatprep.subr.mxu1 %v313_v0 }
  0x1c   :  { %260 = vmatpush3.msra.mxu0 %v18_v21  ;;  %293 = vmatpush3.msra.mxu1 %v110_v31 }
  0x1d   :  { %261 = vmatprep.subr.mxu0 %v313_v0  ;;  %294 = vmatprep.subr.mxu1 %v313_v0 }
  0x1e   :  { %262 = vmatpush3.msra.mxu0 %v17_v23  ;;  %295 = vmatpush3.msra.mxu1 %v109_v32 }
  0x1f   :  { %263 = vmatprep.subr.mxu0 %v313_v0  ;;  %296 = vmatprep.subr.mxu1 %v313_v0 }
  0x20   :  { %264 = vmatpush3.msra.mxu0 %v16_v24  ;;  %297 = vmatpush3.msra.mxu1 %v108_v33 }
  0x21   :  { %266 = vmatmul.mubr.f32.vlgmr.msra.gmra.mxu0 %v198_v25  ;;  %298 = vmatprep.subr.mxu1 %v313_v0 }
  0x22   :  { %299 = vmatpush3.msra.mxu1 %v107_v34 }
  0xe1   :  { %v98_v35 = vpop.f32.mrf.mxu0 }
  0xe2   :  { %v305_v36 = vcvt.f32.s32 %v98_v35  ;;  %v303_v39 = vand.u32 2147483647, %v98_v35  ;;  %v308_v41 = vand.u32 2147483648, %v98_v35 }
  0xe3   :  { %v267_v37 = vpop.f32.mrf.mxu0 }
  0xe4   :  { %v306_v38 = vcvt.s32.f32 %v305_v36  ;;  %vm304_vm1 = vcmp.lt.f32.partialorder %v303_v39, 8388608.0 }
  0xe6   :  { %v307_v40 = vand.u32 2147483647, %v306_v38 }
  0xe8   :  { %v309_v42 = vor.u32 %v308_v41, %v307_v40 }
  0xea   :  { %v310_v43 = vsel %vm304_vm1, %v309_v42, %v98_v35 }
  0xeb   :  { %v103_v44 = vsub.f32 %v98_v35, %v310_v43 }
  0xed   :  { %v104_v45 = vmul.f32 %v103_v44, %v103_v44 }
  0xef   :  { %v105_v46 = vmul.f32 %v104_v45, %v103_v44 }
  0xf1   :  { %v106_v47 = vadd.f32 %v310_v43, %v105_v46 }
  0xf3   :  { %301 = vmatmul.mubr.f32.vlgmr.msra.gmra.mxu1 %v106_v47 }
 0x1b3   :  { %v189_v48 = vpop.f32.mrf.mxu1 }
 0x1b4   :  { %v190_v49 = vadd.f32 128.0, %v189_v48 }
 0x1b5   :  { %v302_v50 = vpop.f32.mrf.mxu1 }
 0x1b6   :  { %193 = vst [vmem:[%s474_s3] sm:$0xff] %v190_v49 }

// kernel: diff_jpeg.9
= control target key start
LH: loop header
LB: loop body
LE: loop exit
PB: predicated region body
PF: predicated region fallthrough
CT: control target
= control target key end

     0   :  { %vm98_vm0 = vcmask 130048   ;;  %s353_s0 = inlined_call_operand.vmem [shape: f32[32,16], index: 0, kind: input, shape index: {}]   ;;  %s354_s2 = inlined_call_operand.vmem [shape: f32[32,16], index: 2, kind: input, shape index: {}]   ;;  %s355_s1 = inlined_call_operand.vmem [shape: f32[32,16], index: 1, kind: input, shape index: {}]   ;;  %s356_s3 = inlined_call_operand.vmem [shape: f32[32,16], index: 3, kind: output, shape index: {0}]   ;;  %s357_s4 = inlined_call_operand.vmem [shape: f32[32,16], index: 4, kind: output, shape index: {1}]   ;;  %s358_s5 = inlined_call_operand.vmem [shape: f32[32,16], index: 5, kind: output, shape index: {2}]  }
   0x1   :  { %v29_v0 = vld [vmem:[%s354_s2] sm:$0xff]  ;;  %v30_v2 = vld [vmem:[%s354_s2 + $0x8] sm:$0xff]  ;;  %v31_v3 = vld [vmem:[%s354_s2 + $0x10] sm:$0xff] }
   0x2   :  { %v183_v1 = vadd.f32 -128.0, %v29_v0  ;;  %v253_v4 = vld [vmem:[%s353_s0] sm:$0xff]  ;;  %v184_v5 = vadd.f32 -128.0, %v30_v2  ;;  %v185_v6 = vadd.f32 -128.0, %v31_v3  ;;  %v32_v7 = vld [vmem:[%s354_s2 + $0x18] sm:$0xff]  ;;  %v264_v10 = vld [vmem:[%s353_s0 + $0x8] sm:$0xff] }
   0x3   :  { %v21_v8 = vld [vmem:[%s355_s1] sm:$0xff]  ;;  %v186_v11 = vadd.f32 -128.0, %v32_v7  ;;  %v22_v16 = vld [vmem:[%s355_s1 + $0x8] sm:$0xff]  ;;  %v23_v17 = vld [vmem:[%s355_s1 + $0x10] sm:$0xff] }
   0x4   :  { %v37_v9 = vmul.f32 1.402, %v183_v1  ;;  %v266_v12 = vadd.f32 -128.0, %v21_v8  ;;  %v53_v13 = vmul.f32 0.714136, %v183_v1  ;;  %v278_v19 = vld [vmem:[%s353_s0 + $0x10] sm:$0xff] }
   0x5   :  { %v38_v14 = vmul.f32 1.402, %v184_v5  ;;  %v39_v15 = vmul.f32 1.402, %v185_v6  ;;  %v40_v20 = vmul.f32 1.402, %v186_v11 }
   0x6   :  { %v41_v18 = vadd.f32 %v37_v9, %v253_v4  ;;  %v45_v21 = vmul.f32 0.344136, %v266_v12  ;;  %v281_v22 = vadd.f32 -128.0, %v22_v16  ;;  %v288_v25 = vld [vmem:[%s353_s0 + $0x18] sm:$0xff]  ;;  %v54_v26 = vmul.f32 0.714136, %v184_v5 }
   0x7   :  { %v42_v23 = vadd.f32 %v38_v14, %v264_v10  ;;  %v43_v24 = vadd.f32 %v39_v15, %v278_v19  ;;  %v181_v27 = vadd.f32 -128.0, %v23_v17  ;;  %v44_v29 = vadd.f32 %v40_v20, %v288_v25  ;;  %v24_v32 = vld [vmem:[%s355_s1 + $0x18] sm:$0xff] }
   0x8   :  { %v69_v28 = vmax.f32 %v41_v18, 0.0  ;;  %v49_v30 = vsub.f32 %v253_v4, %v45_v21  ;;  %v46_v31 = vmul.f32 0.344136, %v281_v22  ;;  %v55_v36 = vmul.f32 0.714136, %v185_v6 }
   0x9   :  { %v70_v33 = vmax.f32 %v42_v23, 0.0  ;;  %v71_v34 = vmax.f32 %v43_v24, 0.0  ;;  %v47_v35 = vmul.f32 0.344136, %v181_v27  ;;  %v72_v38 = vmax.f32 %v44_v29, 0.0 }
   0xa   :  { %v73_v37 = vmin.f32 %v69_v28, 255.0  ;;  %v57_v39 = vsub.f32 %v49_v30, %v53_v13  ;;  %v50_v40 = vsub.f32 %v264_v10, %v46_v31  ;;  %v182_v44 = vadd.f32 -128.0, %v24_v32 }
   0xb   :  { %v74_v41 = vmin.f32 %v70_v33, 255.0  ;;  %v75_v42 = vmin.f32 %v71_v34, 255.0  ;;  %v51_v43 = vsub.f32 %v278_v19, %v47_v35  ;;  %v76_v46 = vmin.f32 %v72_v38, 255.0 }
   0xc   :  { %v78_v45 = vmul.f32 0.003921569, %v73_v37  ;;  %v103_v47 = vmax.f32 %v57_v39, 0.0  ;;  %v58_v48 = vsub.f32 %v50_v40, %v54_v26  ;;  %v48_v52 = vmul.f32 0.344136, %v182_v44 }
   0xd   :  { %v79_v49 = vmul.f32 0.003921569, %v74_v41  ;;  %v80_v50 = vmul.f32 0.003921569, %v75_v42  ;;  %v59_v51 = vsub.f32 %v51_v43, %v55_v36  ;;  %v81_v54 = vmul.f32 0.003921569, %v76_v46 }
   0xe   :  { %v82_v53 = vmul.f32 2.0, %v78_v45  ;;  %v107_v55 = vmin.f32 %v103_v47, 255.0  ;;  %v104_v56 = vmax.f32 %v58_v48, 0.0  ;;  %v52_v60 = vsub.f32 %v288_v25, %v48_v52 }
   0xf   :  { %v83_v57 = vmul.f32 2.0, %v79_v49  ;;  %v84_v58 = vmul.f32 2.0, %v80_v50  ;;  %v105_v59 = vmax.f32 %v59_v51, 0.0  ;;  %v85_v62 = vmul.f32 2.0, %v81_v54 }
  0x10   :  { %v187_v61 = vadd.f32 -1.0, %v82_v53  ;;  %v111_v63 = vmul.f32 0.003921569, %v107_v55  ;;  %v108_v0 = vmin.f32 %v104_v56, 255.0  ;;  %v56_v5 = vmul.f32 0.714136, %v186_v11 }
  0x11   :  { %v188_v1 = vadd.f32 -1.0, %v83_v57  ;;  %v189_v2 = vadd.f32 -1.0, %v84_v58  ;;  %v109_v3 = vmin.f32 %v105_v59, 255.0  ;;  %v190_v7 = vadd.f32 -1.0, %v85_v62 }
  0x12   :  { %v191_v6 = vclamps-f32 %v187_v61, 1.0  ;;  %v115_v8 = vmul.f32 2.0, %v111_v63  ;;  %v112_v9 = vmul.f32 0.003921569, %v108_v0  ;;  %v60_v16 = vsub.f32 %v52_v60, %v56_v5 }
  0x13   :  { %v192_v13 = vclamps-f32 %v188_v1, 1.0  ;;  %v193_v14 = vclamps-f32 %v189_v2, 1.0  ;;  %v113_v15 = vmul.f32 0.003921569, %v109_v3  ;;  %v194_v17 = vclamps-f32 %v190_v7, 1.0 }
  0x14   :  { %99 = vst.msk [vmem:[%s356_s3] sm:$0xff] %vm98_vm0, %v191_v6  ;;  %v195_v18 = vadd.f32 -1.0, %v115_v8  ;;  %v116_v20 = vmul.f32 2.0, %v112_v9  ;;  %v61_v21 = vmul.f32 1.772, %v266_v12  ;;  %v106_v23 = vmax.f32 %v60_v16, 0.0 }
  0x15   :  { %100 = vst.msk [vmem:[%s356_s3 + $0x8] sm:$0xff] %vm98_vm0, %v192_v13  ;;  %101 = vst.msk [vmem:[%s356_s3 + $0x10] sm:$0xff] %vm98_vm0, %v193_v14  ;;  %v117_v11 = vmul.f32 2.0, %v113_v15  ;;  %v62_v24 = vmul.f32 1.772, %v281_v22 }
  0x16   :  { %v63_v26 = vmul.f32 1.772, %v181_v27  ;;  %102 = vst.msk [vmem:[%s356_s3 + $0x18] sm:$0xff] %vm98_vm0, %v194_v17  ;;  %v199_v12 = vclamps-f32 %v195_v18, 1.0  ;;  %v196_v28 = vadd.f32 -1.0, %v116_v20  ;;  %v65_v29 = vadd.f32 %v61_v21, %v253_v4 }
  0x17   :  { %v64_v30 = vmul.f32 1.772, %v182_v44  ;;  %v197_v31 = vadd.f32 -1.0, %v117_v11  ;;  %v110_v32 = vmin.f32 %v106_v23, 255.0  ;;  %v66_v33 = vadd.f32 %v62_v24, %v264_v10 }
  0x18   :  { %v67_v34 = vadd.f32 %v63_v26, %v278_v19  ;;  %131 = vst.msk [vmem:[%s357_s4] sm:$0xff] %vm98_vm0, %v199_v12  ;;  %v200_v22 = vclamps-f32 %v196_v28, 1.0  ;;  %v135_v27 = vmax.f32 %v65_v29, 0.0 }
  0x19   :  { %v68_v35 = vadd.f32 %v64_v30, %v288_v25  ;;  %v201_v36 = vclamps-f32 %v197_v31, 1.0  ;;  %v114_v37 = vmul.f32 0.003921569, %v110_v32  ;;  %v136_v38 = vmax.f32 %v66_v33, 0.0 }
  0x1a   :  { %v137_v4 = vmax.f32 %v67_v34, 0.0  ;;  %132 = vst.msk [vmem:[%s357_s4 + $0x8] sm:$0xff] %vm98_vm0, %v200_v22  ;;  %v139_v10 = vmin.f32 %v135_v27, 255.0 }
  0x1b   :  { %v138_v19 = vmax.f32 %v68_v35, 0.0  ;;  %133 = vst.msk [vmem:[%s357_s4 + $0x10] sm:$0xff] %vm98_vm0, %v201_v36  ;;  %v118_v39 = vmul.f32 2.0, %v114_v37  ;;  %v140_v40 = vmin.f32 %v136_v38, 255.0 }
  0x1c   :  { %v141_v41 = vmin.f32 %v137_v4, 255.0  ;;  %v143_v25 = vmul.f32 0.003921569, %v139_v10 }
  0x1d   :  { %v142_v42 = vmin.f32 %v138_v19, 255.0  ;;  %v198_v43 = vadd.f32 -1.0, %v118_v39  ;;  %v144_v44 = vmul.f32 0.003921569, %v140_v40 }
  0x1e   :  { %v145_v45 = vmul.f32 0.003921569, %v141_v41  ;;  %v147_v46 = vmul.f32 2.0, %v143_v25 }
  0x1f   :  { %v146_v47 = vmul.f32 0.003921569, %v142_v42  ;;  %v202_v48 = vclamps-f32 %v198_v43, 1.0  ;;  %v148_v49 = vmul.f32 2.0, %v144_v44 }
  0x20   :  { %v149_v50 = vmul.f32 2.0, %v145_v45  ;;  %v203_v51 = vadd.f32 -1.0, %v147_v46 }
  0x21   :  { %v150_v52 = vmul.f32 2.0, %v146_v47  ;;  %134 = vst.msk [vmem:[%s357_s4 + $0x18] sm:$0xff] %vm98_vm0, %v202_v48  ;;  %v204_v53 = vadd.f32 -1.0, %v148_v49 }
  0x22   :  { %v205_v54 = vadd.f32 -1.0, %v149_v50  ;;  %v207_v55 = vclamps-f32 %v203_v51, 1.0 }
  0x23   :  { %v206_v56 = vadd.f32 -1.0, %v150_v52  ;;  %v208_v57 = vclamps-f32 %v204_v53, 1.0 }
  0x24   :  { %v209_v58 = vclamps-f32 %v205_v54, 1.0  ;;  %163 = vst.msk [vmem:[%s358_s5] sm:$0xff] %vm98_vm0, %v207_v55 }
  0x25   :  { %v210_v59 = vclamps-f32 %v206_v56, 1.0  ;;  %164 = vst.msk [vmem:[%s358_s5 + $0x8] sm:$0xff] %vm98_vm0, %v208_v57 }
  0x26   :  { %165 = vst.msk [vmem:[%s358_s5 + $0x10] sm:$0xff] %vm98_vm0, %v209_v58 }
  0x27   :  { %166 = vst.msk [vmem:[%s358_s5 + $0x18] sm:$0xff] %vm98_vm0, %v210_v59 }

</bundles_post_ra>
